<compile_context>
chip_gen: v6e
topology: v6e:2x2x1
jax: 0.10.0
libtpu: 0.0.40
codegen_flags: <defaults>
</compile_context>

<pallas_src>
import functools

import jax
import jax.numpy as jnp
from jax import lax
from jax.experimental import pallas as pl
from jax.experimental.pallas import tpu as pltpu

LANE = 128
SUBLANE = 8
_MIB = 1024 * 1024


def _round_up(n, m):
    return ((n + m - 1) // m) * m


def _pad_to(a, shape):
    return jnp.pad(a, [(0, s - d) for d, s in zip(a.shape, shape)])


def _vmem_capacity_bytes():
    """Physical VMEM of the local TPU (64 MiB on v7x, 128 MiB on v5e/v6e)."""
    try:
        return int(pltpu.get_tpu_info().vmem_capacity_bytes)
    except Exception:
        return 64 * _MIB          # assume the smallest (v7x) if the query fails


def _auto_time_chunk(Bp, E, Hp, Cp, x_bytes, w_bytes, budget_bytes,
                     single_buffer_weights):
    """Largest multiple-of-8 time chunk whose VMEM footprint fits the budget."""
    wbuf = 1 if single_buffer_weights else 2
    fixed = (wbuf * (E * Hp + Hp * Hp + Hp * Cp) * w_bytes   # weight blocks
             + 2 * (Hp + Cp) * 4                             # f32 biases
             + Bp * Hp * 4)                                  # hidden state scratch
    per_step = (2 * Bp * E * x_bytes        # double-buffered x block
                + Bp * Hp * 4               # pre_scr row-group
                + Hp * 4                    # hm_scr row
                + 2 * Cp * 4)               # double-buffered out block
    avail = budget_bytes - fixed
    t = max(SUBLANE, min(512, (avail // per_step) // SUBLANE * SUBLANE))
    return int(t)


def rnn_mean_fc_kernel(x_ref, wih_ref, whh_ref, b_ref, wfc_ref, bfc_ref,
                       out_ref, h_scr, hm_scr, pre_scr,
                       *, rnn_batch_pad, rnn_batch_true, time_steps,
                       total_steps, unroll):
    """One time-chunk of the Elman recurrence + per-timestep mean + final FC.

    x_ref   : (tS*Bp, E)  embedded tokens of this chunk (compute dtype)
    wih_ref : (E,  Hp)    W_ih^T  (compute dtype, zero-padded)
    whh_ref : (Hp, Hp)    W_hh^T  (compute dtype)
    b_ref   : (1,  Hp)    b_ih + b_hh (f32)
    wfc_ref : (Hp, Cp)    W_fc^T  (compute dtype)
    bfc_ref : (1,  Cp)    fc bias (f32)
    out_ref : (tS, Cp)    f32 logits for this chunk (lane-dense store)
    h_scr   : (Bp, Hp)    f32 hidden state, persists across grid steps
    hm_scr  : (tS, Hp)    f32 per-timestep mean(h_t) over the RNN-batch axis
    pre_scr : (tS*Bp, Hp) f32 hoisted input projection X @ W_ih + b
    """
    Bp = rnn_batch_pad
    Bt = rnn_batch_true
    tS = time_steps
    chunk = pl.program_id(0)

    @pl.when(chunk == 0)
    def _init():
        h_scr[...] = jnp.zeros_like(h_scr)
        hm_scr[...] = jnp.zeros_like(hm_scr)

    # Valid (non-padded) timesteps in this chunk; padding is only at the tail.
    valid = jnp.minimum(tS, total_steps - chunk * tS)

    # Hoisted input projection: one MXU matmul per chunk (bf16 in, f32 acc),
    # bias folded once instead of per step.
    pre_scr[...] = (jnp.dot(x_ref[...], wih_ref[...],
                            preferred_element_type=jnp.float32)
                    + b_ref[...])

    inv_b = 1.0 / Bt
    if Bp != Bt:
        # Mask padded RNN-batch rows out of the pooled sum (hoisted, not per-step).
        bmask = (lax.broadcasted_iota(jnp.int32, (Bp, 1), 0)
                 < Bt).astype(jnp.float32)

    # Serial recurrence; padded tail steps are skipped at runtime.
    # TODO(synk): if the bundle dump shows W_hh re-pushed into the MXU every
    #             step, drive it explicitly with pltpu.matmul_push_rhs /
    #             matmul_acc_lhs / matmul_pop to latch the RHS once per chunk.
    def body(t, carry):
        @pl.when(t < valid)
        def _step():
            row = pl.multiple_of(t * Bp, Bp)
            h = h_scr[...]
            h_new = jnp.tanh(
                pre_scr[pl.ds(row, Bp), :]
                + jnp.dot(h.astype(whh_ref.dtype), whh_ref[...],
                          preferred_element_type=jnp.float32))
            if Bp != Bt:
                pooled = jnp.sum(h_new * bmask, axis=0, keepdims=True) * inv_b
            else:
                pooled = jnp.sum(h_new, axis=0, keepdims=True) * inv_b
            hm_scr[pl.ds(t, 1), :] = pooled
            h_scr[...] = h_new
        return carry

    lax.fori_loop(0, tS, body, 0, unroll=unroll)

    # Final Linear on the pooled hidden states of this chunk (lane-dense out).
    out_ref[...] = (jnp.dot(hm_scr[...].astype(wfc_ref.dtype), wfc_ref[...],
                            preferred_element_type=jnp.float32)
                    + bfc_ref[...])


def init_params(key, vocab_size, embed_dim, hidden_size, num_class):
    k_emb, k_ih, k_hh, k_bih, k_bhh, k_fc = jax.random.split(key, 6)
    initrange = 0.5
    emb = jax.random.uniform(k_emb, (vocab_size, embed_dim),
                             minval=-initrange, maxval=initrange,
                             dtype=jnp.float32)
    # RNN weights (deterministic synthetic init; init_weights used randn)
    w_ih = jax.random.normal(k_ih, (hidden_size, embed_dim), jnp.float32)
    w_hh = jax.random.normal(k_hh, (hidden_size, hidden_size), jnp.float32)
    b_ih = jax.random.normal(k_bih, (hidden_size,), jnp.float32) * 0.1
    b_hh = jax.random.normal(k_bhh, (hidden_size,), jnp.float32) * 0.1
    # fc
    w_fc = jax.random.uniform(k_fc, (num_class, hidden_size),
                              minval=-initrange, maxval=initrange,
                              dtype=jnp.float32)
    b_fc = jnp.zeros((num_class,), jnp.float32)
    return {
        "embedding": emb,
        "w_ih_t": w_ih.T,                          # (E, H)
        "w_hh_t": w_hh.T,                          # (H, H)
        "b": (b_ih + b_hh).reshape(1, hidden_size),
        "w_fc_t": w_fc.T,                          # (H, C)
        "b_fc": b_fc.reshape(1, num_class),
    }


def text_classification_rnn_forward(batch_text, params, *,
                                    compute_dtype=jnp.bfloat16):
    # Embedding gather stays in plain JAX (glue).
    # TODO(synk): fuse the gather into the kernel (scalar-prefetch token ids +
    #             per-row DMA gather) to avoid the HBM round-trip of the
    #             (S, B, E) embedded tensor.
    x = jnp.take(params["embedding"], batch_text, axis=0)      # (S, B, E) f32
    S, B, E = x.shape
    H = params["w_hh_t"].shape[0]
    C = params["w_fc_t"].shape[1]
    Hp = _round_up(H, LANE)
    Cp = _round_up(C, LANE)
    Bp = _round_up(B, SUBLANE)                 # sublane-aligned RNN-batch axis

    x_bytes = jnp.dtype(compute_dtype).itemsize
    w_bytes = x_bytes

    # Generation-aware VMEM budget: <=48 MiB on v7x (64 MiB physical),
    # ~96 MiB on v5e/v6e (128 MiB physical).
    vmem_cap = _vmem_capacity_bytes()
    vmem_limit = int(min(0.75 * vmem_cap, 112 * _MIB))

    def build_and_run(single_buffer_weights):
        tS = _auto_time_chunk(Bp, E, Hp, Cp, x_bytes, w_bytes,
                              int(0.8 * vmem_limit), single_buffer_weights)
        tS = min(tS, _round_up(S, SUBLANE))    # never chunk past the sequence
        S_pad = _round_up(S, tS)

        xp = jnp.pad(x, ((0, S_pad - S), (0, Bp - B), (0, 0)))
        xp = xp.reshape(S_pad * Bp, E).astype(compute_dtype)

        # Zero-pad weights to lane-dense (multiple-of-128) hidden / class dims;
        # padding is mathematically inert (tanh(0)=0, zero rows/cols).
        wih_p = _pad_to(params["w_ih_t"], (E, Hp)).astype(compute_dtype)
        whh_p = _pad_to(params["w_hh_t"], (Hp, Hp)).astype(compute_dtype)
        b_p = _pad_to(params["b"], (1, Hp))             # f32
        wfc_p = _pad_to(params["w_fc_t"], (Hp, Cp)).astype(compute_dtype)
        bfc_p = _pad_to(params["b_fc"], (1, Cp))        # f32

        def resident(shape):
            # Constant-index weight blocks: request single buffering so they
            # are not needlessly double-buffered (matters at large Hp on v7x).
            if single_buffer_weights:
                return pl.BlockSpec(shape, lambda i: (0,) * len(shape),
                                    pipeline_mode=pl.Buffered(1))
            return pl.BlockSpec(shape, lambda i: (0,) * len(shape))

        kernel = functools.partial(
            rnn_mean_fc_kernel,
            rnn_batch_pad=Bp, rnn_batch_true=B, time_steps=tS,
            total_steps=S, unroll=min(8, tS))

        out = pl.pallas_call(
            kernel,
            out_shape=jax.ShapeDtypeStruct((S_pad, Cp), jnp.float32),
            grid_spec=pltpu.PrefetchScalarGridSpec(
                num_scalar_prefetch=0,
                grid=(S_pad // tS,),
                in_specs=[
                    pl.BlockSpec((tS * Bp, E), lambda i: (i, 0)),  # x, pipelined over S
                    resident((E, Hp)),      # W_ih^T
                    resident((Hp, Hp)),     # W_hh^T
                    resident((1, Hp)),      # b_ih + b_hh
                    resident((Hp, Cp)),     # W_fc^T
                    resident((1, Cp)),      # fc bias
                ],
                out_specs=pl.BlockSpec((tS, Cp), lambda i: (i, 0)),
                scratch_shapes=[
                    pltpu.VMEM((Bp, Hp), jnp.float32),        # h (carried over grid)
                    pltpu.VMEM((tS, Hp), jnp.float32),        # per-step pooled h
                    pltpu.VMEM((tS * Bp, Hp), jnp.float32),   # X @ W_ih + b
                ],
            ),
            compiler_params=pltpu.CompilerParams(
                # Single serial recurrence chain over time.
                # TODO(synk): add a leading "parallel" grid axis over
                #             independent sequences to use v7x's 2nd TensorCore.
                dimension_semantics=("arbitrary",),
                vmem_limit_bytes=vmem_limit,
            ),
        )(xp, wih_p, whh_p, b_p, wfc_p, bfc_p)
        return out[:S, :C]

    try:
        return build_and_run(single_buffer_weights=True)
    except Exception:
        # pipeline_mode=pl.Buffered(1) not accepted on this jax version; fall
        # back to default double-buffered weights (correct, just more VMEM).
        return build_and_run(single_buffer_weights=False)


def reference_forward(batch_text, params):
    """Pure-JAX replica of the PyTorch forward for verification."""
    x = jnp.take(params["embedding"], batch_text, axis=0)   # (S, B, E)
    S, B, _ = x.shape
    H = params["w_hh_t"].shape[0]

    def step(h, x_t):
        h_new = jnp.tanh(x_t @ params["w_ih_t"]
                         + h @ params["w_hh_t"]
                         + params["b"])
        return h_new, h_new

    _, hs = lax.scan(step, jnp.zeros((B, H), jnp.float32), x)  # (S, B, H)
    pooled = jnp.mean(hs, axis=1)                              # (S, H)
    return pooled @ params["w_fc_t"] + params["b_fc"]          # (S, C)


if __name__ == "__main__":
    vocab_size = 100
    embed_dim = 16
    hidden_size = 32
    num_class = 4
    batch = 2          # dim0 of batch_text -> RNN time axis (S)
    seq = 8            # dim1 of batch_text -> RNN batch axis (B)

    key = jax.random.PRNGKey(0)
    k_tok, k_par = jax.random.split(key)
    batch_text = jax.random.randint(k_tok, (batch, seq), 0, vocab_size,
                                    dtype=jnp.int32)
    params = init_params(k_par, vocab_size, embed_dim, hidden_size, num_class)

    ref = reference_forward(batch_text, params)

    # Tight check: f32 MXU inputs (matches reference math closely).
    out_f32 = jax.block_until_ready(
        text_classification_rnn_forward(batch_text, params,
                                        compute_dtype=jnp.float32))
    assert out_f32.shape == (batch, num_class)
    assert jnp.allclose(out_f32, ref, atol=1e-4, rtol=1e-4), "f32 mismatch vs reference"

    # Performance path: bf16 MXU inputs with f32 accumulation (relaxed tol).
    out = jax.block_until_ready(
        text_classification_rnn_forward(batch_text, params))
    assert out.shape == (batch, num_class)
    assert jnp.allclose(out, ref, atol=1e-1, rtol=1e-1), "bf16 mismatch vs reference"

    print("KERNEL_OK")
</pallas_src>

<mosaic_0001>
module attributes {stable_mosaic.version = 11 : i64} {
  func.func @rnn_mean_fc_kernel(%arg0: i32, %arg1: memref<64x16xf32, #tpu.memory_space<vmem>>, %arg2: memref<16x128xf32, #tpu.memory_space<vmem>>, %arg3: memref<128x128xf32, #tpu.memory_space<vmem>>, %arg4: memref<1x128xf32, #tpu.memory_space<vmem>>, %arg5: memref<128x128xf32, #tpu.memory_space<vmem>>, %arg6: memref<1x128xf32, #tpu.memory_space<vmem>>, %arg7: memref<8x128xf32, #tpu.memory_space<vmem>>, %arg8: memref<8x128xf32, #tpu.memory_space<vmem>>, %arg9: memref<8x128xf32, #tpu.memory_space<vmem>>, %arg10: memref<64x128xf32, #tpu.memory_space<vmem>>) attributes {dimension_semantics = [#tpu.dimension_semantics<arbitrary>], iteration_bounds = array<i64: 1>, scalar_prefetch = 0 : i64, scratch_operands = 3 : i64, tpu.core_type = #tpu.core_type<tc>, window_params = [{transform_indices = @transform_0, window_bounds = array<i64: 64, 16>}, {pipeline_mode = #tpu.pipeline_mode<synchronous>, transform_indices = @transform_1, window_bounds = array<i64: 16, 128>}, {pipeline_mode = #tpu.pipeline_mode<synchronous>, transform_indices = @transform_2, window_bounds = array<i64: 128, 128>}, {pipeline_mode = #tpu.pipeline_mode<synchronous>, transform_indices = @transform_3, window_bounds = array<i64: 1, 128>}, {pipeline_mode = #tpu.pipeline_mode<synchronous>, transform_indices = @transform_4, window_bounds = array<i64: 128, 128>}, {pipeline_mode = #tpu.pipeline_mode<synchronous>, transform_indices = @transform_5, window_bounds = array<i64: 1, 128>}, {transform_indices = @transform_6, window_bounds = array<i64: 8, 128>}]} {
    %c0_i32 = arith.constant 0 : i32
    %0 = arith.cmpi eq, %arg0, %c0_i32 : i32
    %1 = arith.extui %0 : i1 to i32
    %c0_i32_0 = arith.constant 0 : i32
    %2 = arith.cmpi ne, %1, %c0_i32_0 : i32
    scf.if %2 {
      %cst_29 = arith.constant 0.000000e+00 : f32
      %44 = vector.broadcast %cst_29 : f32 to vector<8x128xf32>
      %c0_30 = arith.constant 0 : index
      %c0_31 = arith.constant 0 : index
      %45 = vector.load %arg8[%c0_30, %c0_31] : memref<8x128xf32, #tpu.memory_space<vmem>>, vector<8x128xf32>
      tpu.vector_store %arg8[%c0_30, %c0_31], %44 {strides = array<i32>} : memref<8x128xf32, #tpu.memory_space<vmem>>, vector<8x128xf32>,
      %cst_32 = arith.constant 0.000000e+00 : f32
      %46 = vector.broadcast %cst_32 : f32 to vector<8x128xf32>
      %c0_33 = arith.constant 0 : index
      %c0_34 = arith.constant 0 : index
      %47 = vector.load %arg9[%c0_33, %c0_34] : memref<8x128xf32, #tpu.memory_space<vmem>>, vector<8x128xf32>
      tpu.vector_store %arg9[%c0_33, %c0_34], %46 {strides = array<i32>} : memref<8x128xf32, #tpu.memory_space<vmem>>, vector<8x128xf32>,
    } else {
    }
    %c8_i32 = arith.constant 8 : i32
    %3 = arith.muli %arg0, %c8_i32 : i32
    %c2_i32 = arith.constant 2 : i32
    %4 = arith.subi %c2_i32, %3 : i32
    %c8_i32_1 = arith.constant 8 : i32
    %5 = arith.minsi %c8_i32_1, %4 : i32
    %c0 = arith.constant 0 : index
    %c0_2 = arith.constant 0 : index
    %6 = vector.load %arg1[%c0, %c0_2] : memref<64x16xf32, #tpu.memory_space<vmem>>, vector<64x16xf32>
    %c0_3 = arith.constant 0 : index
    %c0_4 = arith.constant 0 : index
    %7 = vector.load %arg2[%c0_3, %c0_4] : memref<16x128xf32, #tpu.memory_space<vmem>>, vector<16x128xf32>
    %cst = arith.constant dense<0.000000e+00> : vector<64x128xf32>
    %8 = tpu.matmul %6, %7, %cst {dimension_numbers = #tpu.dot_dimension_numbers<[1], [0], [0], [1], [0, 0, 1, 1], [], []>} : vector<64x16xf32>, vector<16x128xf32>, vector<64x128xf32> -> vector<64x128xf32>
    %c0_5 = arith.constant 0 : index
    %c0_6 = arith.constant 0 : index
    %9 = vector.load %arg4[%c0_5, %c0_6] : memref<1x128xf32, #tpu.memory_space<vmem>>, vector<1x128xf32>
    %10 = vector.broadcast %9 : vector<1x128xf32> to vector<64x128xf32>
    %11 = arith.addf %8, %10 : vector<64x128xf32>
    %c0_7 = arith.constant 0 : index
    %c0_8 = arith.constant 0 : index
    %12 = vector.load %arg10[%c0_7, %c0_8] : memref<64x128xf32, #tpu.memory_space<vmem>>, vector<64x128xf32>
    tpu.vector_store %arg10[%c0_7, %c0_8], %11 {strides = array<i32>} : memref<64x128xf32, #tpu.memory_space<vmem>>, vector<64x128xf32>,
    %c0_i32_9 = arith.constant 0 : i32
    %13 = arith.cmpi slt, %c0_i32_9, %5 : i32
    %14 = arith.extui %13 : i1 to i32
    %c0_i32_10 = arith.constant 0 : i32
    %15 = arith.cmpi ne, %14, %c0_i32_10 : i32
    scf.if %15 {
      %c8_i32_29 = arith.constant 8 : i32
      %44 = arith.muli %c0_i32_9, %c8_i32_29 : i32
      %45 = tpu.assume_multiple %44, 8 : i32
      %c0_30 = arith.constant 0 : index
      %c0_31 = arith.constant 0 : index
      %46 = vector.load %arg8[%c0_30, %c0_31] : memref<8x128xf32, #tpu.memory_space<vmem>>, vector<8x128xf32>
      %47 = arith.index_cast %45 : i32 to index
      %c0_32 = arith.constant 0 : index
      %48 = vector.load %arg10[%47, %c0_32] : memref<64x128xf32, #tpu.memory_space<vmem>>, vector<8x128xf32>
      %c0_33 = arith.constant 0 : index
      %c0_34 = arith.constant 0 : index
      %49 = vector.load %arg3[%c0_33, %c0_34] : memref<128x128xf32, #tpu.memory_space<vmem>>, vector<128x128xf32>
      %cst_35 = arith.constant dense<0.000000e+00> : vector<8x128xf32>
      %50 = tpu.matmul %46, %49, %cst_35 {dimension_numbers = #tpu.dot_dimension_numbers<[1], [0], [0], [1], [0, 0, 1, 1], [], []>} : vector<8x128xf32>, vector<128x128xf32>, vector<8x128xf32> -> vector<8x128xf32>
      %51 = arith.addf %48, %50 : vector<8x128xf32>
      %52 = math.tanh %51 : vector<8x128xf32>
      %cst_36 = arith.constant dense<0.000000e+00> : vector<128xf32>
      %53 = vector.multi_reduction <add>, %52, %cst_36 [0] : vector<8x128xf32> to vector<128xf32>
      %54 = vector.shape_cast %53 : vector<128xf32> to vector<1x128xf32>
      %cst_37 = arith.constant 1.250000e-01 : f32
      %55 = vector.broadcast %cst_37 : f32 to vector<1x128xf32>
      %56 = arith.mulf %54, %55 : vector<1x128xf32>
      %57 = arith.index_cast %c0_i32_9 : i32 to index
      %c0_38 = arith.constant 0 : index
      %58 = vector.load %arg9[%57, %c0_38] : memref<8x128xf32, #tpu.memory_space<vmem>>, vector<1x128xf32>
      tpu.vector_store %arg9[%57, %c0_38], %56 {strides = array<i32>} : memref<8x128xf32, #tpu.memory_space<vmem>>, vector<1x128xf32>,
      %c0_39 = arith.constant 0 : index
      %c0_40 = arith.constant 0 : index
      %59 = vector.load %arg8[%c0_39, %c0_40] : memref<8x128xf32, #tpu.memory_space<vmem>>, vector<8x128xf32>
      tpu.vector_store %arg8[%c0_39, %c0_40], %52 {strides = array<i32>} : memref<8x128xf32, #tpu.memory_space<vmem>>, vector<8x128xf32>,
    } else {
    }
    %c1_i32 = arith.constant 1 : i32
    %16 = arith.cmpi slt, %c1_i32, %5 : i32
    %17 = arith.extui %16 : i1 to i32
    %c0_i32_11 = arith.constant 0 : i32
    %18 = arith.cmpi ne, %17, %c0_i32_11 : i32
    scf.if %18 {
      %c8_i32_29 = arith.constant 8 : i32
      %44 = arith.muli %c1_i32, %c8_i32_29 : i32
      %45 = tpu.assume_multiple %44, 8 : i32
      %c0_30 = arith.constant 0 : index
      %c0_31 = arith.constant 0 : index
      %46 = vector.load %arg8[%c0_30, %c0_31] : memref<8x128xf32, #tpu.memory_space<vmem>>, vector<8x128xf32>
      %47 = arith.index_cast %45 : i32 to index
      %c0_32 = arith.constant 0 : index
      %48 = vector.load %arg10[%47, %c0_32] : memref<64x128xf32, #tpu.memory_space<vmem>>, vector<8x128xf32>
      %c0_33 = arith.constant 0 : index
      %c0_34 = arith.constant 0 : index
      %49 = vector.load %arg3[%c0_33, %c0_34] : memref<128x128xf32, #tpu.memory_space<vmem>>, vector<128x128xf32>
      %cst_35 = arith.constant dense<0.000000e+00> : vector<8x128xf32>
      %50 = tpu.matmul %46, %49, %cst_35 {dimension_numbers = #tpu.dot_dimension_numbers<[1], [0], [0], [1], [0, 0, 1, 1], [], []>} : vector<8x128xf32>, vector<128x128xf32>, vector<8x128xf32> -> vector<8x128xf32>
      %51 = arith.addf %48, %50 : vector<8x128xf32>
      %52 = math.tanh %51 : vector<8x128xf32>
      %cst_36 = arith.constant dense<0.000000e+00> : vector<128xf32>
      %53 = vector.multi_reduction <add>, %52, %cst_36 [0] : vector<8x128xf32> to vector<128xf32>
      %54 = vector.shape_cast %53 : vector<128xf32> to vector<1x128xf32>
      %cst_37 = arith.constant 1.250000e-01 : f32
      %55 = vector.broadcast %cst_37 : f32 to vector<1x128xf32>
      %56 = arith.mulf %54, %55 : vector<1x128xf32>
      %57 = arith.index_cast %c1_i32 : i32 to index
      %c0_38 = arith.constant 0 : index
      %58 = vector.load %arg9[%57, %c0_38] : memref<8x128xf32, #tpu.memory_space<vmem>>, vector<1x128xf32>
      tpu.vector_store %arg9[%57, %c0_38], %56 {strides = array<i32>} : memref<8x128xf32, #tpu.memory_space<vmem>>, vector<1x128xf32>,
      %c0_39 = arith.constant 0 : index
      %c0_40 = arith.constant 0 : index
      %59 = vector.load %arg8[%c0_39, %c0_40] : memref<8x128xf32, #tpu.memory_space<vmem>>, vector<8x128xf32>
      tpu.vector_store %arg8[%c0_39, %c0_40], %52 {strides = array<i32>} : memref<8x128xf32, #tpu.memory_space<vmem>>, vector<8x128xf32>,
    } else {
    }
    %c2_i32_12 = arith.constant 2 : i32
    %19 = arith.cmpi slt, %c2_i32_12, %5 : i32
    %20 = arith.extui %19 : i1 to i32
    %c0_i32_13 = arith.constant 0 : i32
    %21 = arith.cmpi ne, %20, %c0_i32_13 : i32
    scf.if %21 {
      %c8_i32_29 = arith.constant 8 : i32
      %44 = arith.muli %c2_i32_12, %c8_i32_29 : i32
      %45 = tpu.assume_multiple %44, 8 : i32
      %c0_30 = arith.constant 0 : index
      %c0_31 = arith.constant 0 : index
      %46 = vector.load %arg8[%c0_30, %c0_31] : memref<8x128xf32, #tpu.memory_space<vmem>>, vector<8x128xf32>
      %47 = arith.index_cast %45 : i32 to index
      %c0_32 = arith.constant 0 : index
      %48 = vector.load %arg10[%47, %c0_32] : memref<64x128xf32, #tpu.memory_space<vmem>>, vector<8x128xf32>
      %c0_33 = arith.constant 0 : index
      %c0_34 = arith.constant 0 : index
      %49 = vector.load %arg3[%c0_33, %c0_34] : memref<128x128xf32, #tpu.memory_space<vmem>>, vector<128x128xf32>
      %cst_35 = arith.constant dense<0.000000e+00> : vector<8x128xf32>
      %50 = tpu.matmul %46, %49, %cst_35 {dimension_numbers = #tpu.dot_dimension_numbers<[1], [0], [0], [1], [0, 0, 1, 1], [], []>} : vector<8x128xf32>, vector<128x128xf32>, vector<8x128xf32> -> vector<8x128xf32>
      %51 = arith.addf %48, %50 : vector<8x128xf32>
      %52 = math.tanh %51 : vector<8x128xf32>
      %cst_36 = arith.constant dense<0.000000e+00> : vector<128xf32>
      %53 = vector.multi_reduction <add>, %52, %cst_36 [0] : vector<8x128xf32> to vector<128xf32>
      %54 = vector.shape_cast %53 : vector<128xf32> to vector<1x128xf32>
      %cst_37 = arith.constant 1.250000e-01 : f32
      %55 = vector.broadcast %cst_37 : f32 to vector<1x128xf32>
      %56 = arith.mulf %54, %55 : vector<1x128xf32>
      %57 = arith.index_cast %c2_i32_12 : i32 to index
      %c0_38 = arith.constant 0 : index
      %58 = vector.load %arg9[%57, %c0_38] : memref<8x128xf32, #tpu.memory_space<vmem>>, vector<1x128xf32>
      tpu.vector_store %arg9[%57, %c0_38], %56 {strides = array<i32>} : memref<8x128xf32, #tpu.memory_space<vmem>>, vector<1x128xf32>,
      %c0_39 = arith.constant 0 : index
      %c0_40 = arith.constant 0 : index
      %59 = vector.load %arg8[%c0_39, %c0_40] : memref<8x128xf32, #tpu.memory_space<vmem>>, vector<8x128xf32>
      tpu.vector_store %arg8[%c0_39, %c0_40], %52 {strides = array<i32>} : memref<8x128xf32, #tpu.memory_space<vmem>>, vector<8x128xf32>,
    } else {
    }
    %c3_i32 = arith.constant 3 : i32
    %22 = arith.cmpi slt, %c3_i32, %5 : i32
    %23 = arith.extui %22 : i1 to i32
    %c0_i32_14 = arith.constant 0 : i32
    %24 = arith.cmpi ne, %23, %c0_i32_14 : i32
    scf.if %24 {
      %c8_i32_29 = arith.constant 8 : i32
      %44 = arith.muli %c3_i32, %c8_i32_29 : i32
      %45 = tpu.assume_multiple %44, 8 : i32
      %c0_30 = arith.constant 0 : index
      %c0_31 = arith.constant 0 : index
      %46 = vector.load %arg8[%c0_30, %c0_31] : memref<8x128xf32, #tpu.memory_space<vmem>>, vector<8x128xf32>
      %47 = arith.index_cast %45 : i32 to index
      %c0_32 = arith.constant 0 : index
      %48 = vector.load %arg10[%47, %c0_32] : memref<64x128xf32, #tpu.memory_space<vmem>>, vector<8x128xf32>
      %c0_33 = arith.constant 0 : index
      %c0_34 = arith.constant 0 : index
      %49 = vector.load %arg3[%c0_33, %c0_34] : memref<128x128xf32, #tpu.memory_space<vmem>>, vector<128x128xf32>
      %cst_35 = arith.constant dense<0.000000e+00> : vector<8x128xf32>
      %50 = tpu.matmul %46, %49, %cst_35 {dimension_numbers = #tpu.dot_dimension_numbers<[1], [0], [0], [1], [0, 0, 1, 1], [], []>} : vector<8x128xf32>, vector<128x128xf32>, vector<8x128xf32> -> vector<8x128xf32>
      %51 = arith.addf %48, %50 : vector<8x128xf32>
      %52 = math.tanh %51 : vector<8x128xf32>
      %cst_36 = arith.constant dense<0.000000e+00> : vector<128xf32>
      %53 = vector.multi_reduction <add>, %52, %cst_36 [0] : vector<8x128xf32> to vector<128xf32>
      %54 = vector.shape_cast %53 : vector<128xf32> to vector<1x128xf32>
      %cst_37 = arith.constant 1.250000e-01 : f32
      %55 = vector.broadcast %cst_37 : f32 to vector<1x128xf32>
      %56 = arith.mulf %54, %55 : vector<1x128xf32>
      %57 = arith.index_cast %c3_i32 : i32 to index
      %c0_38 = arith.constant 0 : index
      %58 = vector.load %arg9[%57, %c0_38] : memref<8x128xf32, #tpu.memory_space<vmem>>, vector<1x128xf32>
      tpu.vector_store %arg9[%57, %c0_38], %56 {strides = array<i32>} : memref<8x128xf32, #tpu.memory_space<vmem>>, vector<1x128xf32>,
      %c0_39 = arith.constant 0 : index
      %c0_40 = arith.constant 0 : index
      %59 = vector.load %arg8[%c0_39, %c0_40] : memref<8x128xf32, #tpu.memory_space<vmem>>, vector<8x128xf32>
      tpu.vector_store %arg8[%c0_39, %c0_40], %52 {strides = array<i32>} : memref<8x128xf32, #tpu.memory_space<vmem>>, vector<8x128xf32>,
    } else {
    }
    %c4_i32 = arith.constant 4 : i32
    %25 = arith.cmpi slt, %c4_i32, %5 : i32
    %26 = arith.extui %25 : i1 to i32
    %c0_i32_15 = arith.constant 0 : i32
    %27 = arith.cmpi ne, %26, %c0_i32_15 : i32
    scf.if %27 {
      %c8_i32_29 = arith.constant 8 : i32
      %44 = arith.muli %c4_i32, %c8_i32_29 : i32
      %45 = tpu.assume_multiple %44, 8 : i32
      %c0_30 = arith.constant 0 : index
      %c0_31 = arith.constant 0 : index
      %46 = vector.load %arg8[%c0_30, %c0_31] : memref<8x128xf32, #tpu.memory_space<vmem>>, vector<8x128xf32>
      %47 = arith.index_cast %45 : i32 to index
      %c0_32 = arith.constant 0 : index
      %48 = vector.load %arg10[%47, %c0_32] : memref<64x128xf32, #tpu.memory_space<vmem>>, vector<8x128xf32>
      %c0_33 = arith.constant 0 : index
      %c0_34 = arith.constant 0 : index
      %49 = vector.load %arg3[%c0_33, %c0_34] : memref<128x128xf32, #tpu.memory_space<vmem>>, vector<128x128xf32>
      %cst_35 = arith.constant dense<0.000000e+00> : vector<8x128xf32>
      %50 = tpu.matmul %46, %49, %cst_35 {dimension_numbers = #tpu.dot_dimension_numbers<[1], [0], [0], [1], [0, 0, 1, 1], [], []>} : vector<8x128xf32>, vector<128x128xf32>, vector<8x128xf32> -> vector<8x128xf32>
      %51 = arith.addf %48, %50 : vector<8x128xf32>
      %52 = math.tanh %51 : vector<8x128xf32>
      %cst_36 = arith.constant dense<0.000000e+00> : vector<128xf32>
      %53 = vector.multi_reduction <add>, %52, %cst_36 [0] : vector<8x128xf32> to vector<128xf32>
      %54 = vector.shape_cast %53 : vector<128xf32> to vector<1x128xf32>
      %cst_37 = arith.constant 1.250000e-01 : f32
      %55 = vector.broadcast %cst_37 : f32 to vector<1x128xf32>
      %56 = arith.mulf %54, %55 : vector<1x128xf32>
      %57 = arith.index_cast %c4_i32 : i32 to index
      %c0_38 = arith.constant 0 : index
      %58 = vector.load %arg9[%57, %c0_38] : memref<8x128xf32, #tpu.memory_space<vmem>>, vector<1x128xf32>
      tpu.vector_store %arg9[%57, %c0_38], %56 {strides = array<i32>} : memref<8x128xf32, #tpu.memory_space<vmem>>, vector<1x128xf32>,
      %c0_39 = arith.constant 0 : index
      %c0_40 = arith.constant 0 : index
      %59 = vector.load %arg8[%c0_39, %c0_40] : memref<8x128xf32, #tpu.memory_space<vmem>>, vector<8x128xf32>
      tpu.vector_store %arg8[%c0_39, %c0_40], %52 {strides = array<i32>} : memref<8x128xf32, #tpu.memory_space<vmem>>, vector<8x128xf32>,
    } else {
    }
    %c5_i32 = arith.constant 5 : i32
    %28 = arith.cmpi slt, %c5_i32, %5 : i32
    %29 = arith.extui %28 : i1 to i32
    %c0_i32_16 = arith.constant 0 : i32
    %30 = arith.cmpi ne, %29, %c0_i32_16 : i32
    scf.if %30 {
      %c8_i32_29 = arith.constant 8 : i32
      %44 = arith.muli %c5_i32, %c8_i32_29 : i32
      %45 = tpu.assume_multiple %44, 8 : i32
      %c0_30 = arith.constant 0 : index
      %c0_31 = arith.constant 0 : index
      %46 = vector.load %arg8[%c0_30, %c0_31] : memref<8x128xf32, #tpu.memory_space<vmem>>, vector<8x128xf32>
      %47 = arith.index_cast %45 : i32 to index
      %c0_32 = arith.constant 0 : index
      %48 = vector.load %arg10[%47, %c0_32] : memref<64x128xf32, #tpu.memory_space<vmem>>, vector<8x128xf32>
      %c0_33 = arith.constant 0 : index
      %c0_34 = arith.constant 0 : index
      %49 = vector.load %arg3[%c0_33, %c0_34] : memref<128x128xf32, #tpu.memory_space<vmem>>, vector<128x128xf32>
      %cst_35 = arith.constant dense<0.000000e+00> : vector<8x128xf32>
      %50 = tpu.matmul %46, %49, %cst_35 {dimension_numbers = #tpu.dot_dimension_numbers<[1], [0], [0], [1], [0, 0, 1, 1], [], []>} : vector<8x128xf32>, vector<128x128xf32>, vector<8x128xf32> -> vector<8x128xf32>
      %51 = arith.addf %48, %50 : vector<8x128xf32>
      %52 = math.tanh %51 : vector<8x128xf32>
      %cst_36 = arith.constant dense<0.000000e+00> : vector<128xf32>
      %53 = vector.multi_reduction <add>, %52, %cst_36 [0] : vector<8x128xf32> to vector<128xf32>
      %54 = vector.shape_cast %53 : vector<128xf32> to vector<1x128xf32>
      %cst_37 = arith.constant 1.250000e-01 : f32
      %55 = vector.broadcast %cst_37 : f32 to vector<1x128xf32>
      %56 = arith.mulf %54, %55 : vector<1x128xf32>
      %57 = arith.index_cast %c5_i32 : i32 to index
      %c0_38 = arith.constant 0 : index
      %58 = vector.load %arg9[%57, %c0_38] : memref<8x128xf32, #tpu.memory_space<vmem>>, vector<1x128xf32>
      tpu.vector_store %arg9[%57, %c0_38], %56 {strides = array<i32>} : memref<8x128xf32, #tpu.memory_space<vmem>>, vector<1x128xf32>,
      %c0_39 = arith.constant 0 : index
      %c0_40 = arith.constant 0 : index
      %59 = vector.load %arg8[%c0_39, %c0_40] : memref<8x128xf32, #tpu.memory_space<vmem>>, vector<8x128xf32>
      tpu.vector_store %arg8[%c0_39, %c0_40], %52 {strides = array<i32>} : memref<8x128xf32, #tpu.memory_space<vmem>>, vector<8x128xf32>,
    } else {
    }
    %c6_i32 = arith.constant 6 : i32
    %31 = arith.cmpi slt, %c6_i32, %5 : i32
    %32 = arith.extui %31 : i1 to i32
    %c0_i32_17 = arith.constant 0 : i32
    %33 = arith.cmpi ne, %32, %c0_i32_17 : i32
    scf.if %33 {
      %c8_i32_29 = arith.constant 8 : i32
      %44 = arith.muli %c6_i32, %c8_i32_29 : i32
      %45 = tpu.assume_multiple %44, 8 : i32
      %c0_30 = arith.constant 0 : index
      %c0_31 = arith.constant 0 : index
      %46 = vector.load %arg8[%c0_30, %c0_31] : memref<8x128xf32, #tpu.memory_space<vmem>>, vector<8x128xf32>
      %47 = arith.index_cast %45 : i32 to index
      %c0_32 = arith.constant 0 : index
      %48 = vector.load %arg10[%47, %c0_32] : memref<64x128xf32, #tpu.memory_space<vmem>>, vector<8x128xf32>
      %c0_33 = arith.constant 0 : index
      %c0_34 = arith.constant 0 : index
      %49 = vector.load %arg3[%c0_33, %c0_34] : memref<128x128xf32, #tpu.memory_space<vmem>>, vector<128x128xf32>
      %cst_35 = arith.constant dense<0.000000e+00> : vector<8x128xf32>
      %50 = tpu.matmul %46, %49, %cst_35 {dimension_numbers = #tpu.dot_dimension_numbers<[1], [0], [0], [1], [0, 0, 1, 1], [], []>} : vector<8x128xf32>, vector<128x128xf32>, vector<8x128xf32> -> vector<8x128xf32>
      %51 = arith.addf %48, %50 : vector<8x128xf32>
      %52 = math.tanh %51 : vector<8x128xf32>
      %cst_36 = arith.constant dense<0.000000e+00> : vector<128xf32>
      %53 = vector.multi_reduction <add>, %52, %cst_36 [0] : vector<8x128xf32> to vector<128xf32>
      %54 = vector.shape_cast %53 : vector<128xf32> to vector<1x128xf32>
      %cst_37 = arith.constant 1.250000e-01 : f32
      %55 = vector.broadcast %cst_37 : f32 to vector<1x128xf32>
      %56 = arith.mulf %54, %55 : vector<1x128xf32>
      %57 = arith.index_cast %c6_i32 : i32 to index
      %c0_38 = arith.constant 0 : index
      %58 = vector.load %arg9[%57, %c0_38] : memref<8x128xf32, #tpu.memory_space<vmem>>, vector<1x128xf32>
      tpu.vector_store %arg9[%57, %c0_38], %56 {strides = array<i32>} : memref<8x128xf32, #tpu.memory_space<vmem>>, vector<1x128xf32>,
      %c0_39 = arith.constant 0 : index
      %c0_40 = arith.constant 0 : index
      %59 = vector.load %arg8[%c0_39, %c0_40] : memref<8x128xf32, #tpu.memory_space<vmem>>, vector<8x128xf32>
      tpu.vector_store %arg8[%c0_39, %c0_40], %52 {strides = array<i32>} : memref<8x128xf32, #tpu.memory_space<vmem>>, vector<8x128xf32>,
    } else {
    }
    %c7_i32 = arith.constant 7 : i32
    %34 = arith.cmpi slt, %c7_i32, %5 : i32
    %35 = arith.extui %34 : i1 to i32
    %c0_i32_18 = arith.constant 0 : i32
    %36 = arith.cmpi ne, %35, %c0_i32_18 : i32
    scf.if %36 {
      %c8_i32_29 = arith.constant 8 : i32
      %44 = arith.muli %c7_i32, %c8_i32_29 : i32
      %45 = tpu.assume_multiple %44, 8 : i32
      %c0_30 = arith.constant 0 : index
      %c0_31 = arith.constant 0 : index
      %46 = vector.load %arg8[%c0_30, %c0_31] : memref<8x128xf32, #tpu.memory_space<vmem>>, vector<8x128xf32>
      %47 = arith.index_cast %45 : i32 to index
      %c0_32 = arith.constant 0 : index
      %48 = vector.load %arg10[%47, %c0_32] : memref<64x128xf32, #tpu.memory_space<vmem>>, vector<8x128xf32>
      %c0_33 = arith.constant 0 : index
      %c0_34 = arith.constant 0 : index
      %49 = vector.load %arg3[%c0_33, %c0_34] : memref<128x128xf32, #tpu.memory_space<vmem>>, vector<128x128xf32>
      %cst_35 = arith.constant dense<0.000000e+00> : vector<8x128xf32>
      %50 = tpu.matmul %46, %49, %cst_35 {dimension_numbers = #tpu.dot_dimension_numbers<[1], [0], [0], [1], [0, 0, 1, 1], [], []>} : vector<8x128xf32>, vector<128x128xf32>, vector<8x128xf32> -> vector<8x128xf32>
      %51 = arith.addf %48, %50 : vector<8x128xf32>
      %52 = math.tanh %51 : vector<8x128xf32>
      %cst_36 = arith.constant dense<0.000000e+00> : vector<128xf32>
      %53 = vector.multi_reduction <add>, %52, %cst_36 [0] : vector<8x128xf32> to vector<128xf32>
      %54 = vector.shape_cast %53 : vector<128xf32> to vector<1x128xf32>
      %cst_37 = arith.constant 1.250000e-01 : f32
      %55 = vector.broadcast %cst_37 : f32 to vector<1x128xf32>
      %56 = arith.mulf %54, %55 : vector<1x128xf32>
      %57 = arith.index_cast %c7_i32 : i32 to index
      %c0_38 = arith.constant 0 : index
      %58 = vector.load %arg9[%57, %c0_38] : memref<8x128xf32, #tpu.memory_space<vmem>>, vector<1x128xf32>
      tpu.vector_store %arg9[%57, %c0_38], %56 {strides = array<i32>} : memref<8x128xf32, #tpu.memory_space<vmem>>, vector<1x128xf32>,
      %c0_39 = arith.constant 0 : index
      %c0_40 = arith.constant 0 : index
      %59 = vector.load %arg8[%c0_39, %c0_40] : memref<8x128xf32, #tpu.memory_space<vmem>>, vector<8x128xf32>
      tpu.vector_store %arg8[%c0_39, %c0_40], %52 {strides = array<i32>} : memref<8x128xf32, #tpu.memory_space<vmem>>, vector<8x128xf32>,
    } else {
    }
    %c8_i32_19 = arith.constant 8 : i32
    %c0_20 = arith.constant 0 : index
    %c0_21 = arith.constant 0 : index
    %37 = vector.load %arg9[%c0_20, %c0_21] : memref<8x128xf32, #tpu.memory_space<vmem>>, vector<8x128xf32>
    %c0_22 = arith.constant 0 : index
    %c0_23 = arith.constant 0 : index
    %38 = vector.load %arg5[%c0_22, %c0_23] : memref<128x128xf32, #tpu.memory_space<vmem>>, vector<128x128xf32>
    %cst_24 = arith.constant dense<0.000000e+00> : vector<8x128xf32>
    %39 = tpu.matmul %37, %38, %cst_24 {dimension_numbers = #tpu.dot_dimension_numbers<[1], [0], [0], [1], [0, 0, 1, 1], [], []>} : vector<8x128xf32>, vector<128x128xf32>, vector<8x128xf32> -> vector<8x128xf32>
    %c0_25 = arith.constant 0 : index
    %c0_26 = arith.constant 0 : index
    %40 = vector.load %arg6[%c0_25, %c0_26] : memref<1x128xf32, #tpu.memory_space<vmem>>, vector<1x128xf32>
    %41 = vector.broadcast %40 : vector<1x128xf32> to vector<8x128xf32>
    %42 = arith.addf %39, %41 : vector<8x128xf32>
    %c0_27 = arith.constant 0 : index
    %c0_28 = arith.constant 0 : index
    %43 = vector.load %arg7[%c0_27, %c0_28] : memref<8x128xf32, #tpu.memory_space<vmem>>, vector<8x128xf32>
    tpu.vector_store %arg7[%c0_27, %c0_28], %42 {strides = array<i32>} : memref<8x128xf32, #tpu.memory_space<vmem>>, vector<8x128xf32>,
    return
  }
  func.func @transform_0(%arg0: i32) -> (i32, i32) {
    %c0_i32 = arith.constant 0 : i32
    %c0_i32_0 = arith.constant 0 : i32
    return %arg0, %c0_i32 : i32, i32
  }
  func.func @transform_1(%arg0: i32) -> (i32, i32) {
    %c0_i32 = arith.constant 0 : i32
    %c0_i32_0 = arith.constant 0 : i32
    %c0_i32_1 = arith.constant 0 : i32
    return %c0_i32, %c0_i32_0 : i32, i32
  }
  func.func @transform_2(%arg0: i32) -> (i32, i32) {
    %c0_i32 = arith.constant 0 : i32
    %c0_i32_0 = arith.constant 0 : i32
    %c0_i32_1 = arith.constant 0 : i32
    return %c0_i32, %c0_i32_0 : i32, i32
  }
  func.func @transform_3(%arg0: i32) -> (i32, i32) {
    %c0_i32 = arith.constant 0 : i32
    %c0_i32_0 = arith.constant 0 : i32
    %c0_i32_1 = arith.constant 0 : i32
    return %c0_i32, %c0_i32_0 : i32, i32
  }
  func.func @transform_4(%arg0: i32) -> (i32, i32) {
    %c0_i32 = arith.constant 0 : i32
    %c0_i32_0 = arith.constant 0 : i32
    %c0_i32_1 = arith.constant 0 : i32
    return %c0_i32, %c0_i32_0 : i32, i32
  }
  func.func @transform_5(%arg0: i32) -> (i32, i32) {
    %c0_i32 = arith.constant 0 : i32
    %c0_i32_0 = arith.constant 0 : i32
    %c0_i32_1 = arith.constant 0 : i32
    return %c0_i32, %c0_i32_0 : i32, i32
  }
  func.func @transform_6(%arg0: i32) -> (i32, i32) {
    %c0_i32 = arith.constant 0 : i32
    %c0_i32_0 = arith.constant 0 : i32
    return %arg0, %c0_i32 : i32, i32
  }
}

module attributes {stable_mosaic.version = 11 : i64} {
  func.func @rnn_mean_fc_kernel(%arg0: i32, %arg1: memref<64x16xf32, #tpu.memory_space<vmem>>, %arg2: memref<16x128xf32, #tpu.memory_space<vmem>>, %arg3: memref<128x128xf32, #tpu.memory_space<vmem>>, %arg4: memref<1x128xf32, #tpu.memory_space<vmem>>, %arg5: memref<128x128xf32, #tpu.memory_space<vmem>>, %arg6: memref<1x128xf32, #tpu.memory_space<vmem>>, %arg7: memref<8x128xf32, #tpu.memory_space<vmem>>, %arg8: memref<8x128xf32, #tpu.memory_space<vmem>>, %arg9: memref<8x128xf32, #tpu.memory_space<vmem>>, %arg10: memref<64x128xf32, #tpu.memory_space<vmem>>) attributes {dimension_semantics = [#tpu.dimension_semantics<arbitrary>], iteration_bounds = array<i64: 1>, scalar_prefetch = 0 : i64, scratch_operands = 3 : i64, tpu.core_type = #tpu.core_type<tc>, window_params = [{transform_indices = @transform_0, window_bounds = array<i64: 64, 16>}, {pipeline_mode = #tpu.pipeline_mode<synchronous>, transform_indices = @transform_1, window_bounds = array<i64: 16, 128>}, {pipeline_mode = #tpu.pipeline_mode<synchronous>, transform_indices = @transform_2, window_bounds = array<i64: 128, 128>}, {pipeline_mode = #tpu.pipeline_mode<synchronous>, transform_indices = @transform_3, window_bounds = array<i64: 1, 128>}, {pipeline_mode = #tpu.pipeline_mode<synchronous>, transform_indices = @transform_4, window_bounds = array<i64: 128, 128>}, {pipeline_mode = #tpu.pipeline_mode<synchronous>, transform_indices = @transform_5, window_bounds = array<i64: 1, 128>}, {transform_indices = @transform_6, window_bounds = array<i64: 8, 128>}]} {
    %c0_i32 = arith.constant 0 : i32
    %0 = arith.cmpi eq, %arg0, %c0_i32 : i32
    %1 = arith.extui %0 : i1 to i32
    %c0_i32_0 = arith.constant 0 : i32
    %2 = arith.cmpi ne, %1, %c0_i32_0 : i32
    scf.if %2 {
      %cst_29 = arith.constant 0.000000e+00 : f32
      %44 = vector.broadcast %cst_29 : f32 to vector<8x128xf32>
      %c0_30 = arith.constant 0 : index
      %c0_31 = arith.constant 0 : index
      %45 = vector.load %arg8[%c0_30, %c0_31] : memref<8x128xf32, #tpu.memory_space<vmem>>, vector<8x128xf32>
      tpu.vector_store %arg8[%c0_30, %c0_31], %44 {strides = array<i32>} : memref<8x128xf32, #tpu.memory_space<vmem>>, vector<8x128xf32>,
      %cst_32 = arith.constant 0.000000e+00 : f32
      %46 = vector.broadcast %cst_32 : f32 to vector<8x128xf32>
      %c0_33 = arith.constant 0 : index
      %c0_34 = arith.constant 0 : index
      %47 = vector.load %arg9[%c0_33, %c0_34] : memref<8x128xf32, #tpu.memory_space<vmem>>, vector<8x128xf32>
      tpu.vector_store %arg9[%c0_33, %c0_34], %46 {strides = array<i32>} : memref<8x128xf32, #tpu.memory_space<vmem>>, vector<8x128xf32>,
    } else {
    }
    %c8_i32 = arith.constant 8 : i32
    %3 = arith.muli %arg0, %c8_i32 : i32
    %c2_i32 = arith.constant 2 : i32
    %4 = arith.subi %c2_i32, %3 : i32
    %c8_i32_1 = arith.constant 8 : i32
    %5 = arith.minsi %c8_i32_1, %4 : i32
    %c0 = arith.constant 0 : index
    %c0_2 = arith.constant 0 : index
    %6 = vector.load %arg1[%c0, %c0_2] : memref<64x16xf32, #tpu.memory_space<vmem>>, vector<64x16xf32>
    %c0_3 = arith.constant 0 : index
    %c0_4 = arith.constant 0 : index
    %7 = vector.load %arg2[%c0_3, %c0_4] : memref<16x128xf32, #tpu.memory_space<vmem>>, vector<16x128xf32>
    %cst = arith.constant dense<0.000000e+00> : vector<64x128xf32>
    %8 = tpu.matmul %6, %7, %cst {dimension_numbers = #tpu.dot_dimension_numbers<[1], [0], [0], [1], [0, 0, 1, 1], [], []>} : vector<64x16xf32>, vector<16x128xf32>, vector<64x128xf32> -> vector<64x128xf32>
    %c0_5 = arith.constant 0 : index
    %c0_6 = arith.constant 0 : index
    %9 = vector.load %arg4[%c0_5, %c0_6] : memref<1x128xf32, #tpu.memory_space<vmem>>, vector<1x128xf32>
    %10 = vector.broadcast %9 : vector<1x128xf32> to vector<64x128xf32>
    %11 = arith.addf %8, %10 : vector<64x128xf32>
    %c0_7 = arith.constant 0 : index
    %c0_8 = arith.constant 0 : index
    %12 = vector.load %arg10[%c0_7, %c0_8] : memref<64x128xf32, #tpu.memory_space<vmem>>, vector<64x128xf32>
    tpu.vector_store %arg10[%c0_7, %c0_8], %11 {strides = array<i32>} : memref<64x128xf32, #tpu.memory_space<vmem>>, vector<64x128xf32>,
    %c0_i32_9 = arith.constant 0 : i32
    %13 = arith.cmpi slt, %c0_i32_9, %5 : i32
    %14 = arith.extui %13 : i1 to i32
    %c0_i32_10 = arith.constant 0 : i32
    %15 = arith.cmpi ne, %14, %c0_i32_10 : i32
    scf.if %15 {
      %c8_i32_29 = arith.constant 8 : i32
      %44 = arith.muli %c0_i32_9, %c8_i32_29 : i32
      %45 = tpu.assume_multiple %44, 8 : i32
      %c0_30 = arith.constant 0 : index
      %c0_31 = arith.constant 0 : index
      %46 = vector.load %arg8[%c0_30, %c0_31] : memref<8x128xf32, #tpu.memory_space<vmem>>, vector<8x128xf32>
      %47 = arith.index_cast %45 : i32 to index
      %c0_32 = arith.constant 0 : index
      %48 = vector.load %arg10[%47, %c0_32] : memref<64x128xf32, #tpu.memory_space<vmem>>, vector<8x128xf32>
      %c0_33 = arith.constant 0 : index
      %c0_34 = arith.constant 0 : index
      %49 = vector.load %arg3[%c0_33, %c0_34] : memref<128x128xf32, #tpu.memory_space<vmem>>, vector<128x128xf32>
      %cst_35 = arith.constant dense<0.000000e+00> : vector<8x128xf32>
      %50 = tpu.matmul %46, %49, %cst_35 {dimension_numbers = #tpu.dot_dimension_numbers<[1], [0], [0], [1], [0, 0, 1, 1], [], []>} : vector<8x128xf32>, vector<128x128xf32>, vector<8x128xf32> -> vector<8x128xf32>
      %51 = arith.addf %48, %50 : vector<8x128xf32>
      %52 = math.tanh %51 : vector<8x128xf32>
      %cst_36 = arith.constant dense<0.000000e+00> : vector<128xf32>
      %53 = vector.multi_reduction <add>, %52, %cst_36 [0] : vector<8x128xf32> to vector<128xf32>
      %54 = vector.shape_cast %53 : vector<128xf32> to vector<1x128xf32>
      %cst_37 = arith.constant 1.250000e-01 : f32
      %55 = vector.broadcast %cst_37 : f32 to vector<1x128xf32>
      %56 = arith.mulf %54, %55 : vector<1x128xf32>
      %57 = arith.index_cast %c0_i32_9 : i32 to index
      %c0_38 = arith.constant 0 : index
      %58 = vector.load %arg9[%57, %c0_38] : memref<8x128xf32, #tpu.memory_space<vmem>>, vector<1x128xf32>
      tpu.vector_store %arg9[%57, %c0_38], %56 {strides = array<i32>} : memref<8x128xf32, #tpu.memory_space<vmem>>, vector<1x128xf32>,
      %c0_39 = arith.constant 0 : index
      %c0_40 = arith.constant 0 : index
      %59 = vector.load %arg8[%c0_39, %c0_40] : memref<8x128xf32, #tpu.memory_space<vmem>>, vector<8x128xf32>
      tpu.vector_store %arg8[%c0_39, %c0_40], %52 {strides = array<i32>} : memref<8x128xf32, #tpu.memory_space<vmem>>, vector<8x128xf32>,
    } else {
    }
    %c1_i32 = arith.constant 1 : i32
    %16 = arith.cmpi slt, %c1_i32, %5 : i32
    %17 = arith.extui %16 : i1 to i32
    %c0_i32_11 = arith.constant 0 : i32
    %18 = arith.cmpi ne, %17, %c0_i32_11 : i32
    scf.if %18 {
      %c8_i32_29 = arith.constant 8 : i32
      %44 = arith.muli %c1_i32, %c8_i32_29 : i32
      %45 = tpu.assume_multiple %44, 8 : i32
      %c0_30 = arith.constant 0 : index
      %c0_31 = arith.constant 0 : index
      %46 = vector.load %arg8[%c0_30, %c0_31] : memref<8x128xf32, #tpu.memory_space<vmem>>, vector<8x128xf32>
      %47 = arith.index_cast %45 : i32 to index
      %c0_32 = arith.constant 0 : index
      %48 = vector.load %arg10[%47, %c0_32] : memref<64x128xf32, #tpu.memory_space<vmem>>, vector<8x128xf32>
      %c0_33 = arith.constant 0 : index
      %c0_34 = arith.constant 0 : index
      %49 = vector.load %arg3[%c0_33, %c0_34] : memref<128x128xf32, #tpu.memory_space<vmem>>, vector<128x128xf32>
      %cst_35 = arith.constant dense<0.000000e+00> : vector<8x128xf32>
      %50 = tpu.matmul %46, %49, %cst_35 {dimension_numbers = #tpu.dot_dimension_numbers<[1], [0], [0], [1], [0, 0, 1, 1], [], []>} : vector<8x128xf32>, vector<128x128xf32>, vector<8x128xf32> -> vector<8x128xf32>
      %51 = arith.addf %48, %50 : vector<8x128xf32>
      %52 = math.tanh %51 : vector<8x128xf32>
      %cst_36 = arith.constant dense<0.000000e+00> : vector<128xf32>
      %53 = vector.multi_reduction <add>, %52, %cst_36 [0] : vector<8x128xf32> to vector<128xf32>
      %54 = vector.shape_cast %53 : vector<128xf32> to vector<1x128xf32>
      %cst_37 = arith.constant 1.250000e-01 : f32
      %55 = vector.broadcast %cst_37 : f32 to vector<1x128xf32>
      %56 = arith.mulf %54, %55 : vector<1x128xf32>
      %57 = arith.index_cast %c1_i32 : i32 to index
      %c0_38 = arith.constant 0 : index
      %58 = vector.load %arg9[%57, %c0_38] : memref<8x128xf32, #tpu.memory_space<vmem>>, vector<1x128xf32>
      tpu.vector_store %arg9[%57, %c0_38], %56 {strides = array<i32>} : memref<8x128xf32, #tpu.memory_space<vmem>>, vector<1x128xf32>,
      %c0_39 = arith.constant 0 : index
      %c0_40 = arith.constant 0 : index
      %59 = vector.load %arg8[%c0_39, %c0_40] : memref<8x128xf32, #tpu.memory_space<vmem>>, vector<8x128xf32>
      tpu.vector_store %arg8[%c0_39, %c0_40], %52 {strides = array<i32>} : memref<8x128xf32, #tpu.memory_space<vmem>>, vector<8x128xf32>,
    } else {
    }
    %c2_i32_12 = arith.constant 2 : i32
    %19 = arith.cmpi slt, %c2_i32_12, %5 : i32
    %20 = arith.extui %19 : i1 to i32
    %c0_i32_13 = arith.constant 0 : i32
    %21 = arith.cmpi ne, %20, %c0_i32_13 : i32
    scf.if %21 {
      %c8_i32_29 = arith.constant 8 : i32
      %44 = arith.muli %c2_i32_12, %c8_i32_29 : i32
      %45 = tpu.assume_multiple %44, 8 : i32
      %c0_30 = arith.constant 0 : index
      %c0_31 = arith.constant 0 : index
      %46 = vector.load %arg8[%c0_30, %c0_31] : memref<8x128xf32, #tpu.memory_space<vmem>>, vector<8x128xf32>
      %47 = arith.index_cast %45 : i32 to index
      %c0_32 = arith.constant 0 : index
      %48 = vector.load %arg10[%47, %c0_32] : memref<64x128xf32, #tpu.memory_space<vmem>>, vector<8x128xf32>
      %c0_33 = arith.constant 0 : index
      %c0_34 = arith.constant 0 : index
      %49 = vector.load %arg3[%c0_33, %c0_34] : memref<128x128xf32, #tpu.memory_space<vmem>>, vector<128x128xf32>
      %cst_35 = arith.constant dense<0.000000e+00> : vector<8x128xf32>
      %50 = tpu.matmul %46, %49, %cst_35 {dimension_numbers = #tpu.dot_dimension_numbers<[1], [0], [0], [1], [0, 0, 1, 1], [], []>} : vector<8x128xf32>, vector<128x128xf32>, vector<8x128xf32> -> vector<8x128xf32>
      %51 = arith.addf %48, %50 : vector<8x128xf32>
      %52 = math.tanh %51 : vector<8x128xf32>
      %cst_36 = arith.constant dense<0.000000e+00> : vector<128xf32>
      %53 = vector.multi_reduction <add>, %52, %cst_36 [0] : vector<8x128xf32> to vector<128xf32>
      %54 = vector.shape_cast %53 : vector<128xf32> to vector<1x128xf32>
      %cst_37 = arith.constant 1.250000e-01 : f32
      %55 = vector.broadcast %cst_37 : f32 to vector<1x128xf32>
      %56 = arith.mulf %54, %55 : vector<1x128xf32>
      %57 = arith.index_cast %c2_i32_12 : i32 to index
      %c0_38 = arith.constant 0 : index
      %58 = vector.load %arg9[%57, %c0_38] : memref<8x128xf32, #tpu.memory_space<vmem>>, vector<1x128xf32>
      tpu.vector_store %arg9[%57, %c0_38], %56 {strides = array<i32>} : memref<8x128xf32, #tpu.memory_space<vmem>>, vector<1x128xf32>,
      %c0_39 = arith.constant 0 : index
      %c0_40 = arith.constant 0 : index
      %59 = vector.load %arg8[%c0_39, %c0_40] : memref<8x128xf32, #tpu.memory_space<vmem>>, vector<8x128xf32>
      tpu.vector_store %arg8[%c0_39, %c0_40], %52 {strides = array<i32>} : memref<8x128xf32, #tpu.memory_space<vmem>>, vector<8x128xf32>,
    } else {
    }
    %c3_i32 = arith.constant 3 : i32
    %22 = arith.cmpi slt, %c3_i32, %5 : i32
    %23 = arith.extui %22 : i1 to i32
    %c0_i32_14 = arith.constant 0 : i32
    %24 = arith.cmpi ne, %23, %c0_i32_14 : i32
    scf.if %24 {
      %c8_i32_29 = arith.constant 8 : i32
      %44 = arith.muli %c3_i32, %c8_i32_29 : i32
      %45 = tpu.assume_multiple %44, 8 : i32
      %c0_30 = arith.constant 0 : index
      %c0_31 = arith.constant 0 : index
      %46 = vector.load %arg8[%c0_30, %c0_31] : memref<8x128xf32, #tpu.memory_space<vmem>>, vector<8x128xf32>
      %47 = arith.index_cast %45 : i32 to index
      %c0_32 = arith.constant 0 : index
      %48 = vector.load %arg10[%47, %c0_32] : memref<64x128xf32, #tpu.memory_space<vmem>>, vector<8x128xf32>
      %c0_33 = arith.constant 0 : index
      %c0_34 = arith.constant 0 : index
      %49 = vector.load %arg3[%c0_33, %c0_34] : memref<128x128xf32, #tpu.memory_space<vmem>>, vector<128x128xf32>
      %cst_35 = arith.constant dense<0.000000e+00> : vector<8x128xf32>
      %50 = tpu.matmul %46, %49, %cst_35 {dimension_numbers = #tpu.dot_dimension_numbers<[1], [0], [0], [1], [0, 0, 1, 1], [], []>} : vector<8x128xf32>, vector<128x128xf32>, vector<8x128xf32> -> vector<8x128xf32>
      %51 = arith.addf %48, %50 : vector<8x128xf32>
      %52 = math.tanh %51 : vector<8x128xf32>
      %cst_36 = arith.constant dense<0.000000e+00> : vector<128xf32>
      %53 = vector.multi_reduction <add>, %52, %cst_36 [0] : vector<8x128xf32> to vector<128xf32>
      %54 = vector.shape_cast %53 : vector<128xf32> to vector<1x128xf32>
      %cst_37 = arith.constant 1.250000e-01 : f32
      %55 = vector.broadcast %cst_37 : f32 to vector<1x128xf32>
      %56 = arith.mulf %54, %55 : vector<1x128xf32>
      %57 = arith.index_cast %c3_i32 : i32 to index
      %c0_38 = arith.constant 0 : index
      %58 = vector.load %arg9[%57, %c0_38] : memref<8x128xf32, #tpu.memory_space<vmem>>, vector<1x128xf32>
      tpu.vector_store %arg9[%57, %c0_38], %56 {strides = array<i32>} : memref<8x128xf32, #tpu.memory_space<vmem>>, vector<1x128xf32>,
      %c0_39 = arith.constant 0 : index
      %c0_40 = arith.constant 0 : index
      %59 = vector.load %arg8[%c0_39, %c0_40] : memref<8x128xf32, #tpu.memory_space<vmem>>, vector<8x128xf32>
      tpu.vector_store %arg8[%c0_39, %c0_40], %52 {strides = array<i32>} : memref<8x128xf32, #tpu.memory_space<vmem>>, vector<8x128xf32>,
    } else {
    }
    %c4_i32 = arith.constant 4 : i32
    %25 = arith.cmpi slt, %c4_i32, %5 : i32
    %26 = arith.extui %25 : i1 to i32
    %c0_i32_15 = arith.constant 0 : i32
    %27 = arith.cmpi ne, %26, %c0_i32_15 : i32
    scf.if %27 {
      %c8_i32_29 = arith.constant 8 : i32
      %44 = arith.muli %c4_i32, %c8_i32_29 : i32
      %45 = tpu.assume_multiple %44, 8 : i32
      %c0_30 = arith.constant 0 : index
      %c0_31 = arith.constant 0 : index
      %46 = vector.load %arg8[%c0_30, %c0_31] : memref<8x128xf32, #tpu.memory_space<vmem>>, vector<8x128xf32>
      %47 = arith.index_cast %45 : i32 to index
      %c0_32 = arith.constant 0 : index
      %48 = vector.load %arg10[%47, %c0_32] : memref<64x128xf32, #tpu.memory_space<vmem>>, vector<8x128xf32>
      %c0_33 = arith.constant 0 : index
      %c0_34 = arith.constant 0 : index
      %49 = vector.load %arg3[%c0_33, %c0_34] : memref<128x128xf32, #tpu.memory_space<vmem>>, vector<128x128xf32>
      %cst_35 = arith.constant dense<0.000000e+00> : vector<8x128xf32>
      %50 = tpu.matmul %46, %49, %cst_35 {dimension_numbers = #tpu.dot_dimension_numbers<[1], [0], [0], [1], [0, 0, 1, 1], [], []>} : vector<8x128xf32>, vector<128x128xf32>, vector<8x128xf32> -> vector<8x128xf32>
      %51 = arith.addf %48, %50 : vector<8x128xf32>
      %52 = math.tanh %51 : vector<8x128xf32>
      %cst_36 = arith.constant dense<0.000000e+00> : vector<128xf32>
      %53 = vector.multi_reduction <add>, %52, %cst_36 [0] : vector<8x128xf32> to vector<128xf32>
      %54 = vector.shape_cast %53 : vector<128xf32> to vector<1x128xf32>
      %cst_37 = arith.constant 1.250000e-01 : f32
      %55 = vector.broadcast %cst_37 : f32 to vector<1x128xf32>
      %56 = arith.mulf %54, %55 : vector<1x128xf32>
      %57 = arith.index_cast %c4_i32 : i32 to index
      %c0_38 = arith.constant 0 : index
      %58 = vector.load %arg9[%57, %c0_38] : memref<8x128xf32, #tpu.memory_space<vmem>>, vector<1x128xf32>
      tpu.vector_store %arg9[%57, %c0_38], %56 {strides = array<i32>} : memref<8x128xf32, #tpu.memory_space<vmem>>, vector<1x128xf32>,
      %c0_39 = arith.constant 0 : index
      %c0_40 = arith.constant 0 : index
      %59 = vector.load %arg8[%c0_39, %c0_40] : memref<8x128xf32, #tpu.memory_space<vmem>>, vector<8x128xf32>
      tpu.vector_store %arg8[%c0_39, %c0_40], %52 {strides = array<i32>} : memref<8x128xf32, #tpu.memory_space<vmem>>, vector<8x128xf32>,
    } else {
    }
    %c5_i32 = arith.constant 5 : i32
    %28 = arith.cmpi slt, %c5_i32, %5 : i32
    %29 = arith.extui %28 : i1 to i32
    %c0_i32_16 = arith.constant 0 : i32
    %30 = arith.cmpi ne, %29, %c0_i32_16 : i32
    scf.if %30 {
      %c8_i32_29 = arith.constant 8 : i32
      %44 = arith.muli %c5_i32, %c8_i32_29 : i32
      %45 = tpu.assume_multiple %44, 8 : i32
      %c0_30 = arith.constant 0 : index
      %c0_31 = arith.constant 0 : index
      %46 = vector.load %arg8[%c0_30, %c0_31] : memref<8x128xf32, #tpu.memory_space<vmem>>, vector<8x128xf32>
      %47 = arith.index_cast %45 : i32 to index
      %c0_32 = arith.constant 0 : index
      %48 = vector.load %arg10[%47, %c0_32] : memref<64x128xf32, #tpu.memory_space<vmem>>, vector<8x128xf32>
      %c0_33 = arith.constant 0 : index
      %c0_34 = arith.constant 0 : index
      %49 = vector.load %arg3[%c0_33, %c0_34] : memref<128x128xf32, #tpu.memory_space<vmem>>, vector<128x128xf32>
      %cst_35 = arith.constant dense<0.000000e+00> : vector<8x128xf32>
      %50 = tpu.matmul %46, %49, %cst_35 {dimension_numbers = #tpu.dot_dimension_numbers<[1], [0], [0], [1], [0, 0, 1, 1], [], []>} : vector<8x128xf32>, vector<128x128xf32>, vector<8x128xf32> -> vector<8x128xf32>
      %51 = arith.addf %48, %50 : vector<8x128xf32>
      %52 = math.tanh %51 : vector<8x128xf32>
      %cst_36 = arith.constant dense<0.000000e+00> : vector<128xf32>
      %53 = vector.multi_reduction <add>, %52, %cst_36 [0] : vector<8x128xf32> to vector<128xf32>
      %54 = vector.shape_cast %53 : vector<128xf32> to vector<1x128xf32>
      %cst_37 = arith.constant 1.250000e-01 : f32
      %55 = vector.broadcast %cst_37 : f32 to vector<1x128xf32>
      %56 = arith.mulf %54, %55 : vector<1x128xf32>
      %57 = arith.index_cast %c5_i32 : i32 to index
      %c0_38 = arith.constant 0 : index
      %58 = vector.load %arg9[%57, %c0_38] : memref<8x128xf32, #tpu.memory_space<vmem>>, vector<1x128xf32>
      tpu.vector_store %arg9[%57, %c0_38], %56 {strides = array<i32>} : memref<8x128xf32, #tpu.memory_space<vmem>>, vector<1x128xf32>,
      %c0_39 = arith.constant 0 : index
      %c0_40 = arith.constant 0 : index
      %59 = vector.load %arg8[%c0_39, %c0_40] : memref<8x128xf32, #tpu.memory_space<vmem>>, vector<8x128xf32>
      tpu.vector_store %arg8[%c0_39, %c0_40], %52 {strides = array<i32>} : memref<8x128xf32, #tpu.memory_space<vmem>>, vector<8x128xf32>,
    } else {
    }
    %c6_i32 = arith.constant 6 : i32
    %31 = arith.cmpi slt, %c6_i32, %5 : i32
    %32 = arith.extui %31 : i1 to i32
    %c0_i32_17 = arith.constant 0 : i32
    %33 = arith.cmpi ne, %32, %c0_i32_17 : i32
    scf.if %33 {
      %c8_i32_29 = arith.constant 8 : i32
      %44 = arith.muli %c6_i32, %c8_i32_29 : i32
      %45 = tpu.assume_multiple %44, 8 : i32
      %c0_30 = arith.constant 0 : index
      %c0_31 = arith.constant 0 : index
      %46 = vector.load %arg8[%c0_30, %c0_31] : memref<8x128xf32, #tpu.memory_space<vmem>>, vector<8x128xf32>
      %47 = arith.index_cast %45 : i32 to index
      %c0_32 = arith.constant 0 : index
      %48 = vector.load %arg10[%47, %c0_32] : memref<64x128xf32, #tpu.memory_space<vmem>>, vector<8x128xf32>
      %c0_33 = arith.constant 0 : index
      %c0_34 = arith.constant 0 : index
      %49 = vector.load %arg3[%c0_33, %c0_34] : memref<128x128xf32, #tpu.memory_space<vmem>>, vector<128x128xf32>
      %cst_35 = arith.constant dense<0.000000e+00> : vector<8x128xf32>
      %50 = tpu.matmul %46, %49, %cst_35 {dimension_numbers = #tpu.dot_dimension_numbers<[1], [0], [0], [1], [0, 0, 1, 1], [], []>} : vector<8x128xf32>, vector<128x128xf32>, vector<8x128xf32> -> vector<8x128xf32>
      %51 = arith.addf %48, %50 : vector<8x128xf32>
      %52 = math.tanh %51 : vector<8x128xf32>
      %cst_36 = arith.constant dense<0.000000e+00> : vector<128xf32>
      %53 = vector.multi_reduction <add>, %52, %cst_36 [0] : vector<8x128xf32> to vector<128xf32>
      %54 = vector.shape_cast %53 : vector<128xf32> to vector<1x128xf32>
      %cst_37 = arith.constant 1.250000e-01 : f32
      %55 = vector.broadcast %cst_37 : f32 to vector<1x128xf32>
      %56 = arith.mulf %54, %55 : vector<1x128xf32>
      %57 = arith.index_cast %c6_i32 : i32 to index
      %c0_38 = arith.constant 0 : index
      %58 = vector.load %arg9[%57, %c0_38] : memref<8x128xf32, #tpu.memory_space<vmem>>, vector<1x128xf32>
      tpu.vector_store %arg9[%57, %c0_38], %56 {strides = array<i32>} : memref<8x128xf32, #tpu.memory_space<vmem>>, vector<1x128xf32>,
      %c0_39 = arith.constant 0 : index
      %c0_40 = arith.constant 0 : index
      %59 = vector.load %arg8[%c0_39, %c0_40] : memref<8x128xf32, #tpu.memory_space<vmem>>, vector<8x128xf32>
      tpu.vector_store %arg8[%c0_39, %c0_40], %52 {strides = array<i32>} : memref<8x128xf32, #tpu.memory_space<vmem>>, vector<8x128xf32>,
    } else {
    }
    %c7_i32 = arith.constant 7 : i32
    %34 = arith.cmpi slt, %c7_i32, %5 : i32
    %35 = arith.extui %34 : i1 to i32
    %c0_i32_18 = arith.constant 0 : i32
    %36 = arith.cmpi ne, %35, %c0_i32_18 : i32
    scf.if %36 {
      %c8_i32_29 = arith.constant 8 : i32
      %44 = arith.muli %c7_i32, %c8_i32_29 : i32
      %45 = tpu.assume_multiple %44, 8 : i32
      %c0_30 = arith.constant 0 : index
      %c0_31 = arith.constant 0 : index
      %46 = vector.load %arg8[%c0_30, %c0_31] : memref<8x128xf32, #tpu.memory_space<vmem>>, vector<8x128xf32>
      %47 = arith.index_cast %45 : i32 to index
      %c0_32 = arith.constant 0 : index
      %48 = vector.load %arg10[%47, %c0_32] : memref<64x128xf32, #tpu.memory_space<vmem>>, vector<8x128xf32>
      %c0_33 = arith.constant 0 : index
      %c0_34 = arith.constant 0 : index
      %49 = vector.load %arg3[%c0_33, %c0_34] : memref<128x128xf32, #tpu.memory_space<vmem>>, vector<128x128xf32>
      %cst_35 = arith.constant dense<0.000000e+00> : vector<8x128xf32>
      %50 = tpu.matmul %46, %49, %cst_35 {dimension_numbers = #tpu.dot_dimension_numbers<[1], [0], [0], [1], [0, 0, 1, 1], [], []>} : vector<8x128xf32>, vector<128x128xf32>, vector<8x128xf32> -> vector<8x128xf32>
      %51 = arith.addf %48, %50 : vector<8x128xf32>
      %52 = math.tanh %51 : vector<8x128xf32>
      %cst_36 = arith.constant dense<0.000000e+00> : vector<128xf32>
      %53 = vector.multi_reduction <add>, %52, %cst_36 [0] : vector<8x128xf32> to vector<128xf32>
      %54 = vector.shape_cast %53 : vector<128xf32> to vector<1x128xf32>
      %cst_37 = arith.constant 1.250000e-01 : f32
      %55 = vector.broadcast %cst_37 : f32 to vector<1x128xf32>
      %56 = arith.mulf %54, %55 : vector<1x128xf32>
      %57 = arith.index_cast %c7_i32 : i32 to index
      %c0_38 = arith.constant 0 : index
      %58 = vector.load %arg9[%57, %c0_38] : memref<8x128xf32, #tpu.memory_space<vmem>>, vector<1x128xf32>
      tpu.vector_store %arg9[%57, %c0_38], %56 {strides = array<i32>} : memref<8x128xf32, #tpu.memory_space<vmem>>, vector<1x128xf32>,
      %c0_39 = arith.constant 0 : index
      %c0_40 = arith.constant 0 : index
      %59 = vector.load %arg8[%c0_39, %c0_40] : memref<8x128xf32, #tpu.memory_space<vmem>>, vector<8x128xf32>
      tpu.vector_store %arg8[%c0_39, %c0_40], %52 {strides = array<i32>} : memref<8x128xf32, #tpu.memory_space<vmem>>, vector<8x128xf32>,
    } else {
    }
    %c8_i32_19 = arith.constant 8 : i32
    %c0_20 = arith.constant 0 : index
    %c0_21 = arith.constant 0 : index
    %37 = vector.load %arg9[%c0_20, %c0_21] : memref<8x128xf32, #tpu.memory_space<vmem>>, vector<8x128xf32>
    %c0_22 = arith.constant 0 : index
    %c0_23 = arith.constant 0 : index
    %38 = vector.load %arg5[%c0_22, %c0_23] : memref<128x128xf32, #tpu.memory_space<vmem>>, vector<128x128xf32>
    %cst_24 = arith.constant dense<0.000000e+00> : vector<8x128xf32>
    %39 = tpu.matmul %37, %38, %cst_24 {dimension_numbers = #tpu.dot_dimension_numbers<[1], [0], [0], [1], [0, 0, 1, 1], [], []>} : vector<8x128xf32>, vector<128x128xf32>, vector<8x128xf32> -> vector<8x128xf32>
    %c0_25 = arith.constant 0 : index
    %c0_26 = arith.constant 0 : index
    %40 = vector.load %arg6[%c0_25, %c0_26] : memref<1x128xf32, #tpu.memory_space<vmem>>, vector<1x128xf32>
    %41 = vector.broadcast %40 : vector<1x128xf32> to vector<8x128xf32>
    %42 = arith.addf %39, %41 : vector<8x128xf32>
    %c0_27 = arith.constant 0 : index
    %c0_28 = arith.constant 0 : index
    %43 = vector.load %arg7[%c0_27, %c0_28] : memref<8x128xf32, #tpu.memory_space<vmem>>, vector<8x128xf32>
    tpu.vector_store %arg7[%c0_27, %c0_28], %42 {strides = array<i32>} : memref<8x128xf32, #tpu.memory_space<vmem>>, vector<8x128xf32>,
    return
  }
  func.func @transform_0(%arg0: i32) -> (i32, i32) {
    %c0_i32 = arith.constant 0 : i32
    %c0_i32_0 = arith.constant 0 : i32
    return %arg0, %c0_i32 : i32, i32
  }
  func.func @transform_1(%arg0: i32) -> (i32, i32) {
    %c0_i32 = arith.constant 0 : i32
    %c0_i32_0 = arith.constant 0 : i32
    %c0_i32_1 = arith.constant 0 : i32
    return %c0_i32, %c0_i32_0 : i32, i32
  }
  func.func @transform_2(%arg0: i32) -> (i32, i32) {
    %c0_i32 = arith.constant 0 : i32
    %c0_i32_0 = arith.constant 0 : i32
    %c0_i32_1 = arith.constant 0 : i32
    return %c0_i32, %c0_i32_0 : i32, i32
  }
  func.func @transform_3(%arg0: i32) -> (i32, i32) {
    %c0_i32 = arith.constant 0 : i32
    %c0_i32_0 = arith.constant 0 : i32
    %c0_i32_1 = arith.constant 0 : i32
    return %c0_i32, %c0_i32_0 : i32, i32
  }
  func.func @transform_4(%arg0: i32) -> (i32, i32) {
    %c0_i32 = arith.constant 0 : i32
    %c0_i32_0 = arith.constant 0 : i32
    %c0_i32_1 = arith.constant 0 : i32
    return %c0_i32, %c0_i32_0 : i32, i32
  }
  func.func @transform_5(%arg0: i32) -> (i32, i32) {
    %c0_i32 = arith.constant 0 : i32
    %c0_i32_0 = arith.constant 0 : i32
    %c0_i32_1 = arith.constant 0 : i32
    return %c0_i32, %c0_i32_0 : i32, i32
  }
  func.func @transform_6(%arg0: i32) -> (i32, i32) {
    %c0_i32 = arith.constant 0 : i32
    %c0_i32_0 = arith.constant 0 : i32
    return %arg0, %c0_i32 : i32, i32
  }
}

</mosaic_0001>

<bundles_post_ra>
// kernel: tpu_custom_call.1
= control target key start
LH: loop header
LB: loop body
LE: loop exit
PB: predicated region body
PF: predicated region fallthrough
CT: control target
= control target key end

     0   :  { %11 = vsyncpa [#allocation6], 0  ;;  %s1582_s0 = inlined_call_operand.vmem [shape: f32[64,16], index: 0, kind: input, shape index: {}]   ;;  %s1583_s1 = inlined_call_operand.vmem [shape: f32[16,128], index: 1, kind: input, shape index: {}]   ;;  %s1584_s2 = inlined_call_operand.hbm [shape: f32[128,128], index: 2, kind: input, shape index: {}]   ;;  %s1585_s3 = inlined_call_operand.vmem [shape: f32[1,128], index: 3, kind: input, shape index: {}]   ;;  %s1586_s4 = inlined_call_operand.hbm [shape: f32[128,128], index: 4, kind: input, shape index: {}]   ;;  %s1587_s5 = inlined_call_operand.vmem [shape: f32[1,128], index: 5, kind: input, shape index: {}]   ;;  %s1588_s6 = inlined_call_operand.hbm [shape: f32[8,128], index: 6, kind: output, shape index: {}]  }
   0x1   :  { %12 = vsyncpa [#allocation9], 0 }
   0x2   :  { %13 = vsyncpa [#allocation7], 0  ;;  %s1428_s21 = smov [#allocation5]  }
   0x3   :  { %s23_s22 = sshll.u32 %s1428_s21, 4  ;;  %s24_s22 = int_to_ptr.vmem [resolvable:$true] %s23_s22 }
   0x4   :  { %s1370_s23 = scalar_lea.vmem %s24_s22, 2048  ;;  %p1375_p1 = scmp.lt.s32.totalorder %s24_s22, %s24_s22 }
   0x5   :  { %p1371_p0 = scmp.ne.s32.totalorder %s24_s22, %s1370_s23  ;;  %p1376_p2 = scmp.lt.s32.totalorder %s1370_s23, %s1370_s23 }
   0x7   :  { %p1377_p3 = por %p1376_p2, %p1375_p1 }
   0x9   :  { %p1378_p4 = pnand %p1377_p3, %p1371_p0 }
   0xb   :  { %1381 = shalt.err (!%p1378_p4)
}
   0xc   :  { %s1429_s24 = smov 128   ;;  %s1430_s25 = smov 8  }
   0xd   :  { %29 = dma.hbm_to_vmem [thread:$0]  %s1584_s2, 2048, %s24_s22, [#allocation6], %s1429_s24, %s1429_s24, %s1430_s25  }
   0xe   :  { %s1431_s28 = smov [#allocation8]  }
   0xf   :  { %s37_s29 = sshll.u32 %s1431_s28, 4  ;;  %s38_s29 = int_to_ptr.vmem [resolvable:$true] %s37_s29 }
  0x10   :  { %s1390_s30 = scalar_lea.vmem %s38_s29, 2048  ;;  %p1395_p6 = scmp.lt.s32.totalorder %s38_s29, %s38_s29 }
  0x11   :  { %p1391_p5 = scmp.ne.s32.totalorder %s38_s29, %s1390_s30  ;;  %p1396_p7 = scmp.lt.s32.totalorder %s1390_s30, %s1390_s30 }
  0x13   :  { %p1397_p8 = por %p1396_p7, %p1395_p6 }
  0x15   :  { %p1398_p9 = pnand %p1397_p8, %p1391_p5 }
  0x17   :  { %1401 = shalt.err (!%p1398_p9)
}
  0x18   :  { %43 = dma.hbm_to_vmem [thread:$0]  %s1586_s4, 2048, %s38_s29, [#allocation9], %s1429_s24, %s1429_s24, %s1430_s25  }
  0x19   :  { %1422 = dma.done.wait [#allocation6], 2048  }
  0x1a   :  { %1423 = vsyncadd [#allocation6], 4294965248 }
  0x1b   :  { %1424 = dma.done.wait [#allocation9], 2048  }
  0x1c   :  { %1425 = vsyncadd [#allocation9], 4294965248  ;;  %v1432_v0 = vmov 0.0   ;;  %vm1433_vm0 = vmmov 0   ;;  %v238_v1 = vld [vmem:[#allocation5 + $0x78] sm:$0xff]  ;;  %v237_v2 = vld [vmem:[#allocation5 + $0x70] sm:$0xff] }
  0x1d   :  { %1246 = vmatprep.subr.mxu1 %v1432_v0  ;;  %57 = vst [vmem:[#allocation3] sm:$0xff] %v1432_v0  ;;  %1278 = vmatprep.mubr.msk.f32.mxu1 %vm1433_vm0, %v1432_v0  ;;  %v236_v3 = vld [vmem:[#allocation5 + $0x68] sm:$0xff]  ;;  %v71_v4 = vld [vmem:[%s1583_s1 + $0x8] sm:$0xff]  ;;  %v70_v6 = vld [vmem:[%s1583_s1] sm:$0xff]  ;;  %vm79_vm1 = vcmask 130048   ;;  %s1434_s28 = smov [#allocation10]  }
  0x1e   :  { %1247 = vmatpush3.msra.mxu1 %v238_v1  ;;  %v235_v5 = vld [vmem:[#allocation5 + $0x60] sm:$0xff]  ;;  %1230 = vmatprep.subr.mxu0 %v71_v4  ;;  %v62_v7 = vld [vmem:[%s1582_s0] sm:$0xff]  ;;  %v233_v10 = vld [vmem:[#allocation5 + $0x50] sm:$0xff]  ;;  %s1149_s29 = sshll.u32 %s1434_s28, 4  ;;  %s1150_s29 = int_to_ptr.vmem [resolvable:$true] %s1149_s29 }
  0x1f   :  { %1248 = vmatprep.subr.mxu1 %v1432_v0  ;;  %1231 = vmatpush3.msra.mxu0 %v71_v4  ;;  %v234_v8 = vld [vmem:[#allocation5 + $0x58] sm:$0xff]  ;;  %v63_v9 = vld [vmem:[%s1582_s0 + $0x8] sm:$0xff]  ;;  %v232_v11 = vld [vmem:[#allocation5 + $0x48] sm:$0xff]  ;;  %s1402_s30 = scalar_lea.vmem %s1150_s29, 128  ;;  %p1407_p11 = scmp.lt.s32.totalorder %s1150_s29, %s1150_s29 }
  0x20   :  { %1249 = vmatpush3.msra.mxu1 %v237_v2  ;;  %1232 = vmatprep.subr.mxu0 %v70_v6  ;;  %v231_v12 = vld [vmem:[#allocation5 + $0x40] sm:$0xff]  ;;  %v230_v13 = vld [vmem:[#allocation5 + $0x38] sm:$0xff]  ;;  %v229_v14 = vld [vmem:[#allocation5 + $0x30] sm:$0xff]  ;;  %p1403_p10 = scmp.ne.s32.totalorder %s1150_s29, %s1402_s30  ;;  %p1408_p12 = scmp.lt.s32.totalorder %s1402_s30, %s1402_s30 }
  0x21   :  { %1250 = vmatprep.subr.mxu1 %v1432_v0  ;;  %1233 = vmatpush3.msra.mxu0 %v70_v6  ;;  %v228_v15 = vld [vmem:[#allocation5 + $0x28] sm:$0xff]  ;;  %v227_v16 = vld [vmem:[#allocation5 + $0x20] sm:$0xff]  ;;  %v226_v17 = vld [vmem:[#allocation5 + $0x18] sm:$0xff] }
  0x22   :  { %1251 = vmatpush3.msra.mxu1 %v236_v3  ;;  %1234 = vmatprep.mubr.msk.f32.mxu0 %vm79_vm1, %v62_v7  ;;  %v225_v18 = vld [vmem:[#allocation5 + $0x10] sm:$0xff]  ;;  %v224_v19 = vld [vmem:[#allocation5 + $0x8] sm:$0xff]  ;;  %v223_v20 = vld [vmem:[#allocation5] sm:$0xff]  ;;  %p1409_p13 = por %p1408_p12, %p1407_p11 }
  0x23   :  { %1252 = vmatprep.subr.mxu1 %v1432_v0  ;;  %1235 = vmatmul.mubr.msk.f32.vlgmr.msra.gmra.mxu0 %vm79_vm1, %v63_v9  ;;  %v64_v21 = vld [vmem:[%s1582_s0 + $0x10] sm:$0xff]  ;;  %v65_v22 = vld [vmem:[%s1582_s0 + $0x18] sm:$0xff]  ;;  %v66_v23 = vld [vmem:[%s1582_s0 + $0x20] sm:$0xff] }
  0x24   :  { %1253 = vmatpush3.msra.mxu1 %v235_v5  ;;  %1281 = vmatprep.subr.mxu0 %v1432_v0  ;;  %v67_v24 = vld [vmem:[%s1582_s0 + $0x28] sm:$0xff]  ;;  %v68_v25 = vld [vmem:[%s1582_s0 + $0x30] sm:$0xff]  ;;  %v69_v26 = vld [vmem:[%s1582_s0 + $0x38] sm:$0xff]  ;;  %p1410_p0 = pnand %p1409_p13, %p1403_p10 }
  0x25   :  { %1254 = vmatprep.subr.mxu1 %v1432_v0  ;;  %1282 = vmatpush3.msra.mxu0 %v238_v1  ;;  %v1159_v27 = vld [vmem:[%s1585_s3] ss:$0 sm:$0xff]  ;;  %v1063_v50 = vld [vmem:[#allocation8 + $0x70] sm:$0xff]  ;;  %v1062_v51 = vld [vmem:[#allocation8 + $0x68] sm:$0xff] }
  0x26   :  { %1255 = vmatpush3.msra.mxu1 %v234_v8  ;;  %1283 = vmatprep.subr.mxu0 %v1432_v0  ;;  %v1064_v49 = vld [vmem:[#allocation8 + $0x78] sm:$0xff]  ;;  %v1061_v52 = vld [vmem:[#allocation8 + $0x60] sm:$0xff]  ;;  %v1059_v54 = vld [vmem:[#allocation8 + $0x50] sm:$0xff] }
  0x27   :  { %1256 = vmatprep.subr.mxu1 %v1432_v0  ;;  %1284 = vmatpush3.msra.mxu0 %v237_v2  ;;  %v1060_v53 = vld [vmem:[#allocation8 + $0x58] sm:$0xff]  ;;  %v1058_v55 = vld [vmem:[#allocation8 + $0x48] sm:$0xff]  ;;  %v1057_v56 = vld [vmem:[#allocation8 + $0x40] sm:$0xff] }
  0x28   :  { %1257 = vmatpush3.msra.mxu1 %v233_v10  ;;  %1285 = vmatprep.subr.mxu0 %v1432_v0  ;;  %v1056_v57 = vld [vmem:[#allocation8 + $0x38] sm:$0xff]  ;;  %v1055_v58 = vld [vmem:[#allocation8 + $0x30] sm:$0xff]  ;;  %v1054_v59 = vld [vmem:[#allocation8 + $0x28] sm:$0xff] }
  0x29   :  { %1258 = vmatprep.subr.mxu1 %v1432_v0  ;;  %1286 = vmatpush3.msra.mxu0 %v236_v3  ;;  %v1053_v60 = vld [vmem:[#allocation8 + $0x20] sm:$0xff]  ;;  %v1052_v61 = vld [vmem:[#allocation8 + $0x18] sm:$0xff]  ;;  %v1051_v62 = vld [vmem:[#allocation8 + $0x10] sm:$0xff] }
  0x2a   :  { %1259 = vmatpush3.msra.mxu1 %v232_v11  ;;  %1287 = vmatprep.subr.mxu0 %v1432_v0  ;;  %v1050_v63 = vld [vmem:[#allocation8 + $0x8] sm:$0xff]  ;;  %v1049_v1 = vld [vmem:[#allocation8] sm:$0xff] }
  0x2b   :  { %1260 = vmatprep.subr.mxu1 %v1432_v0  ;;  %1288 = vmatpush3.msra.mxu0 %v235_v5 }
  0x2c   :  { %1261 = vmatpush3.msra.mxu1 %v231_v12  ;;  %1289 = vmatprep.subr.mxu0 %v1432_v0 }
  0x2d   :  { %1262 = vmatprep.subr.mxu1 %v1432_v0  ;;  %1290 = vmatpush3.msra.mxu0 %v234_v8 }
  0x2e   :  { %1263 = vmatpush3.msra.mxu1 %v230_v13  ;;  %1291 = vmatprep.subr.mxu0 %v1432_v0 }
  0x2f   :  { %1264 = vmatprep.subr.mxu1 %v1432_v0  ;;  %1292 = vmatpush3.msra.mxu0 %v233_v10 }
  0x30   :  { %1265 = vmatpush3.msra.mxu1 %v229_v14  ;;  %1293 = vmatprep.subr.mxu0 %v1432_v0 }
  0x31   :  { %1266 = vmatprep.subr.mxu1 %v1432_v0  ;;  %1294 = vmatpush3.msra.mxu0 %v232_v11 }
  0x32   :  { %1267 = vmatpush3.msra.mxu1 %v228_v15  ;;  %1295 = vmatprep.subr.mxu0 %v1432_v0 }
  0x33   :  { %1268 = vmatprep.subr.mxu1 %v1432_v0  ;;  %1296 = vmatpush3.msra.mxu0 %v231_v12 }
  0x34   :  { %1269 = vmatpush3.msra.mxu1 %v227_v16  ;;  %1297 = vmatprep.subr.mxu0 %v1432_v0 }
  0x35   :  { %1270 = vmatprep.subr.mxu1 %v1432_v0  ;;  %1298 = vmatpush3.msra.mxu0 %v230_v13 }
  0x36   :  { %1271 = vmatpush3.msra.mxu1 %v226_v17  ;;  %1299 = vmatprep.subr.mxu0 %v1432_v0 }
  0x37   :  { %1272 = vmatprep.subr.mxu1 %v1432_v0  ;;  %1300 = vmatpush3.msra.mxu0 %v229_v14 }
  0x38   :  { %1273 = vmatpush3.msra.mxu1 %v225_v18  ;;  %1301 = vmatprep.subr.mxu0 %v1432_v0 }
  0x39   :  { %1274 = vmatprep.subr.mxu1 %v1432_v0  ;;  %1302 = vmatpush3.msra.mxu0 %v228_v15 }
  0x3a   :  { %1275 = vmatpush3.msra.mxu1 %v224_v19  ;;  %1303 = vmatprep.subr.mxu0 %v1432_v0 }
  0x3b   :  { %1276 = vmatprep.subr.mxu1 %v1432_v0  ;;  %1304 = vmatpush3.msra.mxu0 %v227_v16 }
  0x3c   :  { %1277 = vmatpush3.msra.mxu1 %v223_v20  ;;  %1305 = vmatprep.subr.mxu0 %v1432_v0 }
  0x3d   :  { %1279 = vmatmul.mubr.f32.vlgmr.msra.gmra.mxu1 %v1432_v0  ;;  %1316 = vmatprep.subr.mxu1 %v1432_v0 }
  0x3e   :  { %1348 = vmatprep.mubr.msk.f32.mxu1 %vm1433_vm0, %v1432_v0  ;;  %1306 = vmatpush3.msra.mxu0 %v226_v17 }
  0x3f   :  { %1307 = vmatprep.subr.mxu0 %v1432_v0  ;;  %1237 = vmatprep.mubr.msk.f32.mxu0 %vm79_vm1, %v64_v21 }
  0x40   :  { %1308 = vmatpush3.msra.mxu0 %v225_v18  ;;  %1317 = vmatpush3.msra.mxu1 %v1064_v49 }
  0x41   :  { %1309 = vmatprep.subr.mxu0 %v1432_v0  ;;  %1238 = vmatmul.mubr.msk.f32.gmra.mxu0 %vm79_vm1, %v65_v22 }
  0x42   :  { %1310 = vmatpush3.msra.mxu0 %v224_v19  ;;  %1240 = vmatprep.mubr.msk.f32.mxu0 %vm79_vm1, %v66_v23 }
  0x43   :  { %1311 = vmatprep.subr.mxu0 %v1432_v0  ;;  %1318 = vmatprep.subr.mxu1 %v1432_v0 }
  0x44   :  { %1312 = vmatpush3.msra.mxu0 %v223_v20  ;;  %1319 = vmatpush3.msra.mxu1 %v1063_v50 }
  0x45   :  { %1241 = vmatmul.mubr.msk.f32.gmra.mxu0 %vm79_vm1, %v67_v24  ;;  %1320 = vmatprep.subr.mxu1 %v1432_v0 }
  0x46   :  { %1243 = vmatprep.mubr.msk.f32.mxu0 %vm79_vm1, %v68_v25  ;;  %1321 = vmatpush3.msra.mxu1 %v1062_v51 }
  0x47   :  { %1322 = vmatprep.subr.mxu1 %v1432_v0 }
  0x48   :  { %1323 = vmatpush3.msra.mxu1 %v1061_v52 }
  0x49   :  { %1244 = vmatmul.mubr.msk.f32.gmra.mxu0 %vm79_vm1, %v69_v26  ;;  %1324 = vmatprep.subr.mxu1 %v1432_v0 }
  0x4a   :  { %1313 = vmatprep.mubr.msk.f32.mxu0 %vm1433_vm0, %v1432_v0  ;;  %1325 = vmatpush3.msra.mxu1 %v1060_v53 }
  0x4b   :  { %1326 = vmatprep.subr.mxu1 %v1432_v0 }
  0x4c   :  { %1327 = vmatpush3.msra.mxu1 %v1059_v54 }
  0x4d   :  { %1328 = vmatprep.subr.mxu1 %v1432_v0 }
  0x4e   :  { %1329 = vmatpush3.msra.mxu1 %v1058_v55 }
  0x4f   :  { %1330 = vmatprep.subr.mxu1 %v1432_v0 }
  0x50   :  { %1331 = vmatpush3.msra.mxu1 %v1057_v56 }
  0x51   :  { %1332 = vmatprep.subr.mxu1 %v1432_v0 }
  0x52   :  { %1333 = vmatpush3.msra.mxu1 %v1056_v57 }
  0x53   :  { %1334 = vmatprep.subr.mxu1 %v1432_v0 }
  0x54   :  { %1335 = vmatpush3.msra.mxu1 %v1055_v58 }
  0x55   :  { %1336 = vmatprep.subr.mxu1 %v1432_v0 }
  0x56   :  { %1337 = vmatpush3.msra.mxu1 %v1054_v59 }
  0x57   :  { %1338 = vmatprep.subr.mxu1 %v1432_v0 }
  0x58   :  { %1339 = vmatpush3.msra.mxu1 %v1053_v60 }
  0x59   :  { %1340 = vmatprep.subr.mxu1 %v1432_v0 }
  0x5a   :  { %1341 = vmatpush3.msra.mxu1 %v1052_v61 }
  0x5b   :  { %1342 = vmatprep.subr.mxu1 %v1432_v0 }
  0x5c   :  { %1343 = vmatpush3.msra.mxu1 %v1051_v62 }
  0x5d   :  { %1344 = vmatprep.subr.mxu1 %v1432_v0 }
  0x5e   :  { %1345 = vmatpush3.msra.mxu1 %v1050_v63 }
  0x5f   :  { %1346 = vmatprep.subr.mxu1 %v1432_v0  ;;  %v1168_v0 = vld [vmem:[%s1587_s5] ss:$0 sm:$0xff] }
  0x60   :  { %1347 = vmatpush3.msra.mxu1 %v1049_v1 }
  0xe3   :  { %v1236_v28 = vpop.f32.mrf.mxu0 }
  0xe4   :  { %v1558_v29 = vadd.f32 %v1236_v28, %v1159_v27 }
  0xe5   :  { %v170_v30 = vpop.f32.mrf.mxu0 }
  0xe6   :  { %v171_v31 = vadd.f32 %v1159_v27, %v170_v30 }
  0xfd   :  { %v305_v32 = vpop.f32.mrf.mxu1 }
  0xfe   :  { %v309_v33 = vadd.f32 %v305_v32, %v171_v31 }
  0xff   :  { %v1280_v34 = vpop.f32.mrf.mxu1 }
 0x100   :  { %1358 = vtanh.f32 %v309_v33 }
 0x101   :  { %v1239_v43 = vpop.f32.mrf.mxu0 }
 0x103   :  { %v180_v44 = vpop.f32.mrf.mxu0 }
 0x105   :  { %v1242_v45 = vpop.f32.mrf.mxu0 }
 0x107   :  { %v190_v46 = vpop.f32.mrf.mxu0 }
 0x109   :  { %v1245_v47 = vpop.f32.mrf.mxu0 }
 0x10b   :  { %v200_v48 = vpop.f32.mrf.mxu0 }
 0x10d   :  { %v1359_v35 = vpop.eup %1358 }
 0x10e   :  { %v311_v36 = vrot.slane %v1359_v35, 4  ;;  %1314 = vmatmul.mubr.f32.vlgmr.msra.gmra.mxu0 %v1359_v35 }
 0x110   :  { %v312_v37 = vadd.f32 %v1359_v35, %v311_v36 }
 0x112   :  { %v313_v38 = vrot.slane %v312_v37, 2 }
 0x114   :  { %v314_v39 = vadd.f32 %v313_v38, %v312_v37 }
 0x116   :  { %v315_v40 = vrot.slane %v314_v39, 1 }
 0x118   :  { %v316_v41 = vadd.f32 %v315_v40, %v314_v39 }
 0x11a   :  { %v317_v42 = vmul.f32 0.125, %v316_v41 }
 0x11c   :  { %318 = vst [vmem:[#allocation3] sm:$0x1] %v317_v42 }
 0x1ce   :  { %v409_v2 = vpop.f32.mrf.mxu0 }
 0x1cf   :  { %v413_v3 = vadd.f32 %v409_v2, %v1558_v29 }
 0x1d0   :  { %v1315_v4 = vpop.f32.mrf.mxu0 }
 0x1d1   :  { %1360 = vtanh.f32 %v413_v3 }
 0x1de   :  { %v1361_v5 = vpop.eup %1360 }
 0x1df   :  { %v415_v6 = vrot.slane %v1361_v5, 4 }
 0x1e1   :  { %v416_v7 = vadd.f32 %v1361_v5, %v415_v6 }
 0x1e3   :  { %v417_v8 = vrot.slane %v416_v7, 2 }
 0x1e5   :  { %v418_v9 = vadd.f32 %v417_v8, %v416_v7 }
 0x1e7   :  { %v419_v10 = vrot.slane %v418_v9, 1 }
 0x1e9   :  { %v420_v11 = vadd.f32 %v419_v10, %v418_v9 }
 0x1eb   :  { %v421_v12 = vmul.f32 0.125, %v420_v11 }
 0x1ed   :  { %422 = vst [vmem:[#allocation3 + $0x1] sm:$0x1] %v421_v12 }
 0x1f4   :  { %v1048_v13 = vld [vmem:[#allocation3] sm:$0xff] }
 0x1f5   :  { %1349 = vmatmul.mubr.f32.vlgmr.msra.gmra.mxu1 %v1048_v13 }
 0x2b5   :  { %v1138_v14 = vpop.f32.mrf.mxu1 }
 0x2b6   :  { %v1139_v15 = vadd.f32 %v1168_v0, %v1138_v14 }
 0x2b7   :  { %v1350_v16 = vpop.f32.mrf.mxu1 }
 0x2b8   :  { %1142 = vst [vmem:[#allocation10] sm:$0xff] %v1139_v15 }
 0x2b9   :  { %1413 = shalt.err (!%p1410_p0)
}
 0x2ba   :  { %1152 = dma.vmem_to_hbm [thread:$0]  %s1150_s29, 128, %s1588_s6, [#allocation7]  }
 0x2bb   :  { %1426 = dma.done.wait [#allocation7], 128  }
 0x2bc   :  { %1427 = vsyncadd [#allocation7], 4294967168 }
 0x2bd   :  { %1156 = vsyncpa [#allocation6], 1 }
 0x2be   :  { %1157 = vsyncpa [#allocation9], 1 }
 0x2bf   :  { %1158 = vsyncpa [#allocation7], 1 }

// kernel: tpu_custom_call.1
= control target key start
LH: loop header
LB: loop body
LE: loop exit
PB: predicated region body
PF: predicated region fallthrough
CT: control target
= control target key end

     0   :  { %11 = vsyncpa [#allocation6], 0  ;;  %s1582_s0 = inlined_call_operand.vmem [shape: f32[64,16], index: 0, kind: input, shape index: {}]   ;;  %s1583_s1 = inlined_call_operand.vmem [shape: f32[16,128], index: 1, kind: input, shape index: {}]   ;;  %s1584_s2 = inlined_call_operand.hbm [shape: f32[128,128], index: 2, kind: input, shape index: {}]   ;;  %s1585_s3 = inlined_call_operand.vmem [shape: f32[1,128], index: 3, kind: input, shape index: {}]   ;;  %s1586_s4 = inlined_call_operand.hbm [shape: f32[128,128], index: 4, kind: input, shape index: {}]   ;;  %s1587_s5 = inlined_call_operand.vmem [shape: f32[1,128], index: 5, kind: input, shape index: {}]   ;;  %s1588_s6 = inlined_call_operand.hbm [shape: f32[8,128], index: 6, kind: output, shape index: {}]  }
   0x1   :  { %12 = vsyncpa [#allocation9], 0 }
   0x2   :  { %13 = vsyncpa [#allocation7], 0  ;;  %s1428_s21 = smov [#allocation5]  }
   0x3   :  { %s23_s22 = sshll.u32 %s1428_s21, 4  ;;  %s24_s22 = int_to_ptr.vmem [resolvable:$true] %s23_s22 }
   0x4   :  { %s1370_s23 = scalar_lea.vmem %s24_s22, 2048  ;;  %p1375_p1 = scmp.lt.s32.totalorder %s24_s22, %s24_s22 }
   0x5   :  { %p1371_p0 = scmp.ne.s32.totalorder %s24_s22, %s1370_s23  ;;  %p1376_p2 = scmp.lt.s32.totalorder %s1370_s23, %s1370_s23 }
   0x7   :  { %p1377_p3 = por %p1376_p2, %p1375_p1 }
   0x9   :  { %p1378_p4 = pnand %p1377_p3, %p1371_p0 }
   0xb   :  { %1381 = shalt.err (!%p1378_p4)
}
   0xc   :  { %s1429_s24 = smov 128   ;;  %s1430_s25 = smov 8  }
   0xd   :  { %29 = dma.hbm_to_vmem [thread:$0]  %s1584_s2, 2048, %s24_s22, [#allocation6], %s1429_s24, %s1429_s24, %s1430_s25  }
   0xe   :  { %s1431_s28 = smov [#allocation8]  }
   0xf   :  { %s37_s29 = sshll.u32 %s1431_s28, 4  ;;  %s38_s29 = int_to_ptr.vmem [resolvable:$true] %s37_s29 }
  0x10   :  { %s1390_s30 = scalar_lea.vmem %s38_s29, 2048  ;;  %p1395_p6 = scmp.lt.s32.totalorder %s38_s29, %s38_s29 }
  0x11   :  { %p1391_p5 = scmp.ne.s32.totalorder %s38_s29, %s1390_s30  ;;  %p1396_p7 = scmp.lt.s32.totalorder %s1390_s30, %s1390_s30 }
  0x13   :  { %p1397_p8 = por %p1396_p7, %p1395_p6 }
  0x15   :  { %p1398_p9 = pnand %p1397_p8, %p1391_p5 }
  0x17   :  { %1401 = shalt.err (!%p1398_p9)
}
  0x18   :  { %43 = dma.hbm_to_vmem [thread:$0]  %s1586_s4, 2048, %s38_s29, [#allocation9], %s1429_s24, %s1429_s24, %s1430_s25  }
  0x19   :  { %1422 = dma.done.wait [#allocation6], 2048  }
  0x1a   :  { %1423 = vsyncadd [#allocation6], 4294965248 }
  0x1b   :  { %1424 = dma.done.wait [#allocation9], 2048  }
  0x1c   :  { %1425 = vsyncadd [#allocation9], 4294965248  ;;  %v1432_v0 = vmov 0.0   ;;  %vm1433_vm0 = vmmov 0   ;;  %v238_v1 = vld [vmem:[#allocation5 + $0x78] sm:$0xff]  ;;  %v237_v2 = vld [vmem:[#allocation5 + $0x70] sm:$0xff] }
  0x1d   :  { %1246 = vmatprep.subr.mxu1 %v1432_v0  ;;  %57 = vst [vmem:[#allocation3] sm:$0xff] %v1432_v0  ;;  %1278 = vmatprep.mubr.msk.f32.mxu1 %vm1433_vm0, %v1432_v0  ;;  %v236_v3 = vld [vmem:[#allocation5 + $0x68] sm:$0xff]  ;;  %v71_v4 = vld [vmem:[%s1583_s1 + $0x8] sm:$0xff]  ;;  %v70_v6 = vld [vmem:[%s1583_s1] sm:$0xff]  ;;  %vm79_vm1 = vcmask 130048   ;;  %s1434_s28 = smov [#allocation10]  }
  0x1e   :  { %1247 = vmatpush3.msra.mxu1 %v238_v1  ;;  %v235_v5 = vld [vmem:[#allocation5 + $0x60] sm:$0xff]  ;;  %1230 = vmatprep.subr.mxu0 %v71_v4  ;;  %v62_v7 = vld [vmem:[%s1582_s0] sm:$0xff]  ;;  %v233_v10 = vld [vmem:[#allocation5 + $0x50] sm:$0xff]  ;;  %s1149_s29 = sshll.u32 %s1434_s28, 4  ;;  %s1150_s29 = int_to_ptr.vmem [resolvable:$true] %s1149_s29 }
  0x1f   :  { %1248 = vmatprep.subr.mxu1 %v1432_v0  ;;  %1231 = vmatpush3.msra.mxu0 %v71_v4  ;;  %v234_v8 = vld [vmem:[#allocation5 + $0x58] sm:$0xff]  ;;  %v63_v9 = vld [vmem:[%s1582_s0 + $0x8] sm:$0xff]  ;;  %v232_v11 = vld [vmem:[#allocation5 + $0x48] sm:$0xff]  ;;  %s1402_s30 = scalar_lea.vmem %s1150_s29, 128  ;;  %p1407_p11 = scmp.lt.s32.totalorder %s1150_s29, %s1150_s29 }
  0x20   :  { %1249 = vmatpush3.msra.mxu1 %v237_v2  ;;  %1232 = vmatprep.subr.mxu0 %v70_v6  ;;  %v231_v12 = vld [vmem:[#allocation5 + $0x40] sm:$0xff]  ;;  %v230_v13 = vld [vmem:[#allocation5 + $0x38] sm:$0xff]  ;;  %v229_v14 = vld [vmem:[#allocation5 + $0x30] sm:$0xff]  ;;  %p1403_p10 = scmp.ne.s32.totalorder %s1150_s29, %s1402_s30  ;;  %p1408_p12 = scmp.lt.s32.totalorder %s1402_s30, %s1402_s30 }
  0x21   :  { %1250 = vmatprep.subr.mxu1 %v1432_v0  ;;  %1233 = vmatpush3.msra.mxu0 %v70_v6  ;;  %v228_v15 = vld [vmem:[#allocation5 + $0x28] sm:$0xff]  ;;  %v227_v16 = vld [vmem:[#allocation5 + $0x20] sm:$0xff]  ;;  %v226_v17 = vld [vmem:[#allocation5 + $0x18] sm:$0xff] }
  0x22   :  { %1251 = vmatpush3.msra.mxu1 %v236_v3  ;;  %1234 = vmatprep.mubr.msk.f32.mxu0 %vm79_vm1, %v62_v7  ;;  %v225_v18 = vld [vmem:[#allocation5 + $0x10] sm:$0xff]  ;;  %v224_v19 = vld [vmem:[#allocation5 + $0x8] sm:$0xff]  ;;  %v223_v20 = vld [vmem:[#allocation5] sm:$0xff]  ;;  %p1409_p13 = por %p1408_p12, %p1407_p11 }
  0x23   :  { %1252 = vmatprep.subr.mxu1 %v1432_v0  ;;  %1235 = vmatmul.mubr.msk.f32.vlgmr.msra.gmra.mxu0 %vm79_vm1, %v63_v9  ;;  %v64_v21 = vld [vmem:[%s1582_s0 + $0x10] sm:$0xff]  ;;  %v65_v22 = vld [vmem:[%s1582_s0 + $0x18] sm:$0xff]  ;;  %v66_v23 = vld [vmem:[%s1582_s0 + $0x20] sm:$0xff] }
  0x24   :  { %1253 = vmatpush3.msra.mxu1 %v235_v5  ;;  %1281 = vmatprep.subr.mxu0 %v1432_v0  ;;  %v67_v24 = vld [vmem:[%s1582_s0 + $0x28] sm:$0xff]  ;;  %v68_v25 = vld [vmem:[%s1582_s0 + $0x30] sm:$0xff]  ;;  %v69_v26 = vld [vmem:[%s1582_s0 + $0x38] sm:$0xff]  ;;  %p1410_p0 = pnand %p1409_p13, %p1403_p10 }
  0x25   :  { %1254 = vmatprep.subr.mxu1 %v1432_v0  ;;  %1282 = vmatpush3.msra.mxu0 %v238_v1  ;;  %v1159_v27 = vld [vmem:[%s1585_s3] ss:$0 sm:$0xff]  ;;  %v1063_v50 = vld [vmem:[#allocation8 + $0x70] sm:$0xff]  ;;  %v1062_v51 = vld [vmem:[#allocation8 + $0x68] sm:$0xff] }
  0x26   :  { %1255 = vmatpush3.msra.mxu1 %v234_v8  ;;  %1283 = vmatprep.subr.mxu0 %v1432_v0  ;;  %v1064_v49 = vld [vmem:[#allocation8 + $0x78] sm:$0xff]  ;;  %v1061_v52 = vld [vmem:[#allocation8 + $0x60] sm:$0xff]  ;;  %v1059_v54 = vld [vmem:[#allocation8 + $0x50] sm:$0xff] }
  0x27   :  { %1256 = vmatprep.subr.mxu1 %v1432_v0  ;;  %1284 = vmatpush3.msra.mxu0 %v237_v2  ;;  %v1060_v53 = vld [vmem:[#allocation8 + $0x58] sm:$0xff]  ;;  %v1058_v55 = vld [vmem:[#allocation8 + $0x48] sm:$0xff]  ;;  %v1057_v56 = vld [vmem:[#allocation8 + $0x40] sm:$0xff] }
  0x28   :  { %1257 = vmatpush3.msra.mxu1 %v233_v10  ;;  %1285 = vmatprep.subr.mxu0 %v1432_v0  ;;  %v1056_v57 = vld [vmem:[#allocation8 + $0x38] sm:$0xff]  ;;  %v1055_v58 = vld [vmem:[#allocation8 + $0x30] sm:$0xff]  ;;  %v1054_v59 = vld [vmem:[#allocation8 + $0x28] sm:$0xff] }
  0x29   :  { %1258 = vmatprep.subr.mxu1 %v1432_v0  ;;  %1286 = vmatpush3.msra.mxu0 %v236_v3  ;;  %v1053_v60 = vld [vmem:[#allocation8 + $0x20] sm:$0xff]  ;;  %v1052_v61 = vld [vmem:[#allocation8 + $0x18] sm:$0xff]  ;;  %v1051_v62 = vld [vmem:[#allocation8 + $0x10] sm:$0xff] }
  0x2a   :  { %1259 = vmatpush3.msra.mxu1 %v232_v11  ;;  %1287 = vmatprep.subr.mxu0 %v1432_v0  ;;  %v1050_v63 = vld [vmem:[#allocation8 + $0x8] sm:$0xff]  ;;  %v1049_v1 = vld [vmem:[#allocation8] sm:$0xff] }
  0x2b   :  { %1260 = vmatprep.subr.mxu1 %v1432_v0  ;;  %1288 = vmatpush3.msra.mxu0 %v235_v5 }
  0x2c   :  { %1261 = vmatpush3.msra.mxu1 %v231_v12  ;;  %1289 = vmatprep.subr.mxu0 %v1432_v0 }
  0x2d   :  { %1262 = vmatprep.subr.mxu1 %v1432_v0  ;;  %1290 = vmatpush3.msra.mxu0 %v234_v8 }
  0x2e   :  { %1263 = vmatpush3.msra.mxu1 %v230_v13  ;;  %1291 = vmatprep.subr.mxu0 %v1432_v0 }
  0x2f   :  { %1264 = vmatprep.subr.mxu1 %v1432_v0  ;;  %1292 = vmatpush3.msra.mxu0 %v233_v10 }
  0x30   :  { %1265 = vmatpush3.msra.mxu1 %v229_v14  ;;  %1293 = vmatprep.subr.mxu0 %v1432_v0 }
  0x31   :  { %1266 = vmatprep.subr.mxu1 %v1432_v0  ;;  %1294 = vmatpush3.msra.mxu0 %v232_v11 }
  0x32   :  { %1267 = vmatpush3.msra.mxu1 %v228_v15  ;;  %1295 = vmatprep.subr.mxu0 %v1432_v0 }
  0x33   :  { %1268 = vmatprep.subr.mxu1 %v1432_v0  ;;  %1296 = vmatpush3.msra.mxu0 %v231_v12 }
  0x34   :  { %1269 = vmatpush3.msra.mxu1 %v227_v16  ;;  %1297 = vmatprep.subr.mxu0 %v1432_v0 }
  0x35   :  { %1270 = vmatprep.subr.mxu1 %v1432_v0  ;;  %1298 = vmatpush3.msra.mxu0 %v230_v13 }
  0x36   :  { %1271 = vmatpush3.msra.mxu1 %v226_v17  ;;  %1299 = vmatprep.subr.mxu0 %v1432_v0 }
  0x37   :  { %1272 = vmatprep.subr.mxu1 %v1432_v0  ;;  %1300 = vmatpush3.msra.mxu0 %v229_v14 }
  0x38   :  { %1273 = vmatpush3.msra.mxu1 %v225_v18  ;;  %1301 = vmatprep.subr.mxu0 %v1432_v0 }
  0x39   :  { %1274 = vmatprep.subr.mxu1 %v1432_v0  ;;  %1302 = vmatpush3.msra.mxu0 %v228_v15 }
  0x3a   :  { %1275 = vmatpush3.msra.mxu1 %v224_v19  ;;  %1303 = vmatprep.subr.mxu0 %v1432_v0 }
  0x3b   :  { %1276 = vmatprep.subr.mxu1 %v1432_v0  ;;  %1304 = vmatpush3.msra.mxu0 %v227_v16 }
  0x3c   :  { %1277 = vmatpush3.msra.mxu1 %v223_v20  ;;  %1305 = vmatprep.subr.mxu0 %v1432_v0 }
  0x3d   :  { %1279 = vmatmul.mubr.f32.vlgmr.msra.gmra.mxu1 %v1432_v0  ;;  %1316 = vmatprep.subr.mxu1 %v1432_v0 }
  0x3e   :  { %1348 = vmatprep.mubr.msk.f32.mxu1 %vm1433_vm0, %v1432_v0  ;;  %1306 = vmatpush3.msra.mxu0 %v226_v17 }
  0x3f   :  { %1307 = vmatprep.subr.mxu0 %v1432_v0  ;;  %1237 = vmatprep.mubr.msk.f32.mxu0 %vm79_vm1, %v64_v21 }
  0x40   :  { %1308 = vmatpush3.msra.mxu0 %v225_v18  ;;  %1317 = vmatpush3.msra.mxu1 %v1064_v49 }
  0x41   :  { %1309 = vmatprep.subr.mxu0 %v1432_v0  ;;  %1238 = vmatmul.mubr.msk.f32.gmra.mxu0 %vm79_vm1, %v65_v22 }
  0x42   :  { %1310 = vmatpush3.msra.mxu0 %v224_v19  ;;  %1240 = vmatprep.mubr.msk.f32.mxu0 %vm79_vm1, %v66_v23 }
  0x43   :  { %1311 = vmatprep.subr.mxu0 %v1432_v0  ;;  %1318 = vmatprep.subr.mxu1 %v1432_v0 }
  0x44   :  { %1312 = vmatpush3.msra.mxu0 %v223_v20  ;;  %1319 = vmatpush3.msra.mxu1 %v1063_v50 }
  0x45   :  { %1241 = vmatmul.mubr.msk.f32.gmra.mxu0 %vm79_vm1, %v67_v24  ;;  %1320 = vmatprep.subr.mxu1 %v1432_v0 }
  0x46   :  { %1243 = vmatprep.mubr.msk.f32.mxu0 %vm79_vm1, %v68_v25  ;;  %1321 = vmatpush3.msra.mxu1 %v1062_v51 }
  0x47   :  { %1322 = vmatprep.subr.mxu1 %v1432_v0 }
  0x48   :  { %1323 = vmatpush3.msra.mxu1 %v1061_v52 }
  0x49   :  { %1244 = vmatmul.mubr.msk.f32.gmra.mxu0 %vm79_vm1, %v69_v26  ;;  %1324 = vmatprep.subr.mxu1 %v1432_v0 }
  0x4a   :  { %1313 = vmatprep.mubr.msk.f32.mxu0 %vm1433_vm0, %v1432_v0  ;;  %1325 = vmatpush3.msra.mxu1 %v1060_v53 }
  0x4b   :  { %1326 = vmatprep.subr.mxu1 %v1432_v0 }
  0x4c   :  { %1327 = vmatpush3.msra.mxu1 %v1059_v54 }
  0x4d   :  { %1328 = vmatprep.subr.mxu1 %v1432_v0 }
  0x4e   :  { %1329 = vmatpush3.msra.mxu1 %v1058_v55 }
  0x4f   :  { %1330 = vmatprep.subr.mxu1 %v1432_v0 }
  0x50   :  { %1331 = vmatpush3.msra.mxu1 %v1057_v56 }
  0x51   :  { %1332 = vmatprep.subr.mxu1 %v1432_v0 }
  0x52   :  { %1333 = vmatpush3.msra.mxu1 %v1056_v57 }
  0x53   :  { %1334 = vmatprep.subr.mxu1 %v1432_v0 }
  0x54   :  { %1335 = vmatpush3.msra.mxu1 %v1055_v58 }
  0x55   :  { %1336 = vmatprep.subr.mxu1 %v1432_v0 }
  0x56   :  { %1337 = vmatpush3.msra.mxu1 %v1054_v59 }
  0x57   :  { %1338 = vmatprep.subr.mxu1 %v1432_v0 }
  0x58   :  { %1339 = vmatpush3.msra.mxu1 %v1053_v60 }
  0x59   :  { %1340 = vmatprep.subr.mxu1 %v1432_v0 }
  0x5a   :  { %1341 = vmatpush3.msra.mxu1 %v1052_v61 }
  0x5b   :  { %1342 = vmatprep.subr.mxu1 %v1432_v0 }
  0x5c   :  { %1343 = vmatpush3.msra.mxu1 %v1051_v62 }
  0x5d   :  { %1344 = vmatprep.subr.mxu1 %v1432_v0 }
  0x5e   :  { %1345 = vmatpush3.msra.mxu1 %v1050_v63 }
  0x5f   :  { %1346 = vmatprep.subr.mxu1 %v1432_v0  ;;  %v1168_v0 = vld [vmem:[%s1587_s5] ss:$0 sm:$0xff] }
  0x60   :  { %1347 = vmatpush3.msra.mxu1 %v1049_v1 }
  0xe3   :  { %v1236_v28 = vpop.f32.mrf.mxu0 }
  0xe4   :  { %v1558_v29 = vadd.f32 %v1236_v28, %v1159_v27 }
  0xe5   :  { %v170_v30 = vpop.f32.mrf.mxu0 }
  0xe6   :  { %v171_v31 = vadd.f32 %v1159_v27, %v170_v30 }
  0xfd   :  { %v305_v32 = vpop.f32.mrf.mxu1 }
  0xfe   :  { %v309_v33 = vadd.f32 %v305_v32, %v171_v31 }
  0xff   :  { %v1280_v34 = vpop.f32.mrf.mxu1 }
 0x100   :  { %1358 = vtanh.f32 %v309_v33 }
 0x101   :  { %v1239_v43 = vpop.f32.mrf.mxu0 }
 0x103   :  { %v180_v44 = vpop.f32.mrf.mxu0 }
 0x105   :  { %v1242_v45 = vpop.f32.mrf.mxu0 }
 0x107   :  { %v190_v46 = vpop.f32.mrf.mxu0 }
 0x109   :  { %v1245_v47 = vpop.f32.mrf.mxu0 }
 0x10b   :  { %v200_v48 = vpop.f32.mrf.mxu0 }
 0x10d   :  { %v1359_v35 = vpop.eup %1358 }
 0x10e   :  { %v311_v36 = vrot.slane %v1359_v35, 4  ;;  %1314 = vmatmul.mubr.f32.vlgmr.msra.gmra.mxu0 %v1359_v35 }
 0x110   :  { %v312_v37 = vadd.f32 %v1359_v35, %v311_v36 }
 0x112   :  { %v313_v38 = vrot.slane %v312_v37, 2 }
 0x114   :  { %v314_v39 = vadd.f32 %v313_v38, %v312_v37 }
 0x116   :  { %v315_v40 = vrot.slane %v314_v39, 1 }
 0x118   :  { %v316_v41 = vadd.f32 %v315_v40, %v314_v39 }
 0x11a   :  { %v317_v42 = vmul.f32 0.125, %v316_v41 }
 0x11c   :  { %318 = vst [vmem:[#allocation3] sm:$0x1] %v317_v42 }
 0x1ce   :  { %v409_v2 = vpop.f32.mrf.mxu0 }
 0x1cf   :  { %v413_v3 = vadd.f32 %v409_v2, %v1558_v29 }
 0x1d0   :  { %v1315_v4 = vpop.f32.mrf.mxu0 }
 0x1d1   :  { %1360 = vtanh.f32 %v413_v3 }
 0x1de   :  { %v1361_v5 = vpop.eup %1360 }
 0x1df   :  { %v415_v6 = vrot.slane %v1361_v5, 4 }
 0x1e1   :  { %v416_v7 = vadd.f32 %v1361_v5, %v415_v6 }
 0x1e3   :  { %v417_v8 = vrot.slane %v416_v7, 2 }
 0x1e5   :  { %v418_v9 = vadd.f32 %v417_v8, %v416_v7 }
 0x1e7   :  { %v419_v10 = vrot.slane %v418_v9, 1 }
 0x1e9   :  { %v420_v11 = vadd.f32 %v419_v10, %v418_v9 }
 0x1eb   :  { %v421_v12 = vmul.f32 0.125, %v420_v11 }
 0x1ed   :  { %422 = vst [vmem:[#allocation3 + $0x1] sm:$0x1] %v421_v12 }
 0x1f4   :  { %v1048_v13 = vld [vmem:[#allocation3] sm:$0xff] }
 0x1f5   :  { %1349 = vmatmul.mubr.f32.vlgmr.msra.gmra.mxu1 %v1048_v13 }
 0x2b5   :  { %v1138_v14 = vpop.f32.mrf.mxu1 }
 0x2b6   :  { %v1139_v15 = vadd.f32 %v1168_v0, %v1138_v14 }
 0x2b7   :  { %v1350_v16 = vpop.f32.mrf.mxu1 }
 0x2b8   :  { %1142 = vst [vmem:[#allocation10] sm:$0xff] %v1139_v15 }
 0x2b9   :  { %1413 = shalt.err (!%p1410_p0)
}
 0x2ba   :  { %1152 = dma.vmem_to_hbm [thread:$0]  %s1150_s29, 128, %s1588_s6, [#allocation7]  }
 0x2bb   :  { %1426 = dma.done.wait [#allocation7], 128  }
 0x2bc   :  { %1427 = vsyncadd [#allocation7], 4294967168 }
 0x2bd   :  { %1156 = vsyncpa [#allocation6], 1 }
 0x2be   :  { %1157 = vsyncpa [#allocation9], 1 }
 0x2bf   :  { %1158 = vsyncpa [#allocation7], 1 }

</bundles_post_ra>
